<compile_context>
chip_gen: v7x
topology: tpu7x:2x2x1
jax: 0.10.0
libtpu: 0.0.40
codegen_flags: <defaults>
</compile_context>

<pallas_src>
import jax
import jax.numpy as jnp
from jax.experimental import pallas as pl
from jax.experimental.pallas import tpu as pltpu


def _round_up(x, m):
    return ((x + m - 1) // m) * m


def _linear_relu_kernel(x_ref, w_ref, b_ref, o_ref):
    """One (B_pad, tn) output strip; reduction axis k is the inner grid axis.

    x_ref : (B_pad, tk)  bf16 input block (streamed, follows k)
    w_ref : (tk, tn)     bf16 weight tile (the only large HBM traffic)
    b_ref : (1, tn)      f32 bias strip
    o_ref : (B_pad, tn)  f32 output strip, used directly as the accumulator
    """
    k = pl.program_id(1)

    @pl.when(k == 0)
    def _init():
        o_ref[...] = jnp.zeros_like(o_ref)

    o_ref[...] += jnp.dot(x_ref[...], w_ref[...], preferred_element_type=jnp.float32)

    @pl.when(k == pl.num_programs(1) - 1)
    def _finish():
        o_ref[...] = jnp.maximum(o_ref[...] + b_ref[...], 0.0)


def linear_relu(x2d, w_kn, b2d, *, tn, tk, vmem_limit_bytes=48 * 1024 * 1024):
    """x2d: (B_pad, K_pad) bf16, w_kn: (K_pad, N_pad) bf16, b2d: (1, N_pad) f32
    -> (B_pad, N_pad) f32 = relu(x @ w + b)."""
    B, K = x2d.shape
    Kw, N = w_kn.shape
    assert K == Kw and K % tk == 0 and N % tn == 0, (K, Kw, N, tk, tn)

    grid = (N // tn, K // tk)  # reduction axis last

    # Advisory cost hint: weight stream dominates; x is re-fetched once per j-block.
    flops = 2 * B * K * N
    bytes_accessed = (
        K * N * w_kn.dtype.itemsize
        + (N // tn) * B * K * x2d.dtype.itemsize
        + N * b2d.dtype.itemsize
        + B * N * 4
    )

    return pl.pallas_call(
        _linear_relu_kernel,
        out_shape=jax.ShapeDtypeStruct((B, N), jnp.float32),
        grid_spec=pltpu.PrefetchScalarGridSpec(
            num_scalar_prefetch=0,
            grid=grid,
            in_specs=[
                # x block streams along k (tiny; no resident double-buffered full-K copy).
                pl.BlockSpec((B, tk), lambda j, k: (0, k)),
                # weight tiles stream from HBM (bf16).
                pl.BlockSpec((tk, tn), lambda j, k: (k, j)),
                # bias strip per output column block.
                pl.BlockSpec((1, tn), lambda j, k: (0, j)),
            ],
            out_specs=pl.BlockSpec((B, tn), lambda j, k: (0, j)),
        ),
        compiler_params=pltpu.CompilerParams(
            dimension_semantics=("parallel", "arbitrary"),
            vmem_limit_bytes=vmem_limit_bytes,
        ),
        cost_estimate=pl.CostEstimate(
            flops=flops, transcendentals=0, bytes_accessed=bytes_accessed
        ),
    )(x2d, w_kn, b2d)


def _pick_out_tile(d_out, tn_max):
    """Pick tn (multiple of 128) so the parallel j axis has >= 2 blocks when possible
    (v7x megacore), and the padded N."""
    n_rounded = _round_up(d_out, 128)
    tn = min(tn_max, n_rounded)
    while tn > 128 and _round_up(n_rounded, tn) // tn < 2:
        tn = _round_up(tn // 2, 128)
    n_pad = _round_up(n_rounded, tn)
    return tn, n_pad


class LatentAdapterPallas:
    """Pallas port of LatentAdapter: y = relu(Linear(x.view(B, -1))).view(B, -1, F, H, W)."""

    def __init__(self, frame_num, height, width, in_channels=4, out_channels=2,
                 key=jax.random.PRNGKey(0), tk_max=1024, tn_max=4096):
        self.frame_num = frame_num
        self.height = height
        self.width = width
        self.in_channels = in_channels
        self.out_channels = out_channels

        d_in = in_channels * frame_num * height * width
        d_out = out_channels * frame_num * height * width
        self.d_in, self.d_out = d_in, d_out

        # Deterministic init mirroring nn.Linear defaults: U(-1/sqrt(fan_in), +1/sqrt(fan_in)).
        # Kept in torch layout (D_out, D_in) f32 as the "reference" parameters.
        kw, kb = jax.random.split(key)
        bound = 1.0 / jnp.sqrt(jnp.float32(d_in))
        self.weight = jax.random.uniform(
            kw, (d_out, d_in), jnp.float32, minval=-bound, maxval=bound
        )
        self.bias = jax.random.uniform(
            kb, (d_out,), jnp.float32, minval=-bound, maxval=bound
        )

        # Static tile selection + padding (done once at init).
        self.tk = min(tk_max, _round_up(d_in, 128))
        self.k_pad = _round_up(d_in, self.tk)
        self.tn, self.n_pad = _pick_out_tile(d_out, tn_max)

        # One-time transpose + zero-pad into kernel layout (K_pad, N_pad), stored bf16.
        w_kn = jnp.zeros((self.k_pad, self.n_pad), jnp.bfloat16)
        w_kn = w_kn.at[:d_in, :d_out].set(self.weight.T.astype(jnp.bfloat16))
        self._w_kernel = w_kn
        self._b_kernel = (
            jnp.zeros((1, self.n_pad), jnp.float32).at[0, :d_out].set(self.bias)
        )

    def __call__(self, x):
        # x: (B, C_in, F, H, W) NCDHW -> flatten exactly like torch x.view(B, -1)
        B = x.shape[0]
        b_pad = max(8, _round_up(B, 8))  # f32 sublane count -> unmasked output stores
        x2d = x.reshape(B, -1).astype(jnp.bfloat16)
        x2d = jnp.pad(x2d, ((0, b_pad - B), (0, self.k_pad - self.d_in)))
        out = linear_relu(x2d, self._w_kernel, self._b_kernel, tn=self.tn, tk=self.tk)
        out = out[:B, : self.d_out]
        return out.reshape(B, -1, self.frame_num, self.height, self.width)


if __name__ == "__main__":
    # Small shapes that still exercise the k-reduction loop, the j (parallel) split,
    # and all padding paths:
    # B=2, in_channels=4, out_channels=2, frames=2, H=W=14
    # -> D_in = 1568 (tk=1024, K_pad=2048, 2 k-steps), D_out = 784 (tn=512, N_pad=1024, 2 j-steps).
    B, C_in, C_out, F, H, W = 2, 4, 2, 2, 14, 14

    key = jax.random.PRNGKey(0)
    kx, kp = jax.random.split(key)
    x = jax.random.normal(kx, (B, C_in, F, H, W), jnp.float32)

    adapter = LatentAdapterPallas(F, H, W, in_channels=C_in, out_channels=C_out, key=kp)

    out = adapter(x)
    out = jax.block_until_ready(out)
    assert out.shape == (B, C_out, F, H, W), out.shape

    # Pure-JAX reference with the same bf16-product / f32-accumulate math path.
    x_bf = x.reshape(B, -1).astype(jnp.bfloat16).astype(jnp.float32)
    w_bf = adapter.weight.astype(jnp.bfloat16).astype(jnp.float32)
    ref = jnp.maximum(x_bf @ w_bf.T + adapter.bias, 0.0).reshape(B, -1, F, H, W)
    assert jnp.allclose(out, ref, atol=2e-3, rtol=2e-3), "mismatch vs reference"

    # Sanity vs the full-f32 torch-style reference (bf16-class tolerance).
    ref_f32 = jnp.maximum(x.reshape(B, -1) @ adapter.weight.T + adapter.bias, 0.0)
    assert jnp.allclose(out.reshape(B, -1), ref_f32, atol=5e-2, rtol=5e-2)

    print("KERNEL_OK")
</pallas_src>

<mosaic_0001>
module attributes {stable_mosaic.version = 11 : i64} {
  func.func @_linear_relu_kernel(%arg0: i32, %arg1: i32, %arg2: memref<8x1024xbf16, #tpu.memory_space<vmem>>, %arg3: memref<1024x512xbf16, #tpu.memory_space<vmem>>, %arg4: memref<1x512xf32, #tpu.memory_space<vmem>>, %arg5: memref<8x512xf32, #tpu.memory_space<vmem>>) attributes {dimension_semantics = [#tpu.dimension_semantics<parallel>, #tpu.dimension_semantics<arbitrary>], iteration_bounds = array<i64: 2, 2>, scalar_prefetch = 0 : i64, scratch_operands = 0 : i64, tpu.core_type = #tpu.core_type<tc>, window_params = [{transform_indices = @transform_0, window_bounds = array<i64: 8, 1024>}, {transform_indices = @transform_1, window_bounds = array<i64: 1024, 512>}, {transform_indices = @transform_2, window_bounds = array<i64: 1, 512>}, {transform_indices = @transform_3, window_bounds = array<i64: 8, 512>}]} {
    %c0_i32 = arith.constant 0 : i32
    %0 = arith.cmpi eq, %arg1, %c0_i32 : i32
    %1 = arith.extui %0 : i1 to i32
    %c0_i32_0 = arith.constant 0 : i32
    %2 = arith.cmpi ne, %1, %c0_i32_0 : i32
    scf.if %2 {
      %cst_9 = arith.constant 0.000000e+00 : f32
      %12 = vector.broadcast %cst_9 : f32 to vector<8x512xf32>
      %c0_10 = arith.constant 0 : index
      %c0_11 = arith.constant 0 : index
      %13 = vector.load %arg5[%c0_10, %c0_11] : memref<8x512xf32, #tpu.memory_space<vmem>>, vector<8x512xf32>
      tpu.vector_store %arg5[%c0_10, %c0_11], %12 {strides = array<i32>} : memref<8x512xf32, #tpu.memory_space<vmem>>, vector<8x512xf32>,
    } else {
    }
    %c0 = arith.constant 0 : index
    %c0_1 = arith.constant 0 : index
    %3 = vector.load %arg5[%c0, %c0_1] : memref<8x512xf32, #tpu.memory_space<vmem>>, vector<8x512xf32>
    %c0_2 = arith.constant 0 : index
    %c0_3 = arith.constant 0 : index
    %4 = vector.load %arg2[%c0_2, %c0_3] : memref<8x1024xbf16, #tpu.memory_space<vmem>>, vector<8x1024xbf16>
    %c0_4 = arith.constant 0 : index
    %c0_5 = arith.constant 0 : index
    %5 = vector.load %arg3[%c0_4, %c0_5] : memref<1024x512xbf16, #tpu.memory_space<vmem>>, vector<1024x512xbf16>
    %cst = arith.constant dense<0.000000e+00> : vector<8x512xf32>
    %6 = tpu.matmul %4, %5, %cst {dimension_numbers = #tpu.dot_dimension_numbers<[1], [0], [0], [1], [0, 0, 1, 1], [], []>} : vector<8x1024xbf16>, vector<1024x512xbf16>, vector<8x512xf32> -> vector<8x512xf32>
    %7 = arith.addf %3, %6 : vector<8x512xf32>
    %c0_6 = arith.constant 0 : index
    %c0_7 = arith.constant 0 : index
    %8 = vector.load %arg5[%c0_6, %c0_7] : memref<8x512xf32, #tpu.memory_space<vmem>>, vector<8x512xf32>
    tpu.vector_store %arg5[%c0_6, %c0_7], %7 {strides = array<i32>} : memref<8x512xf32, #tpu.memory_space<vmem>>, vector<8x512xf32>,
    %c1_i32 = arith.constant 1 : i32
    %9 = arith.cmpi eq, %arg1, %c1_i32 : i32
    %10 = arith.extui %9 : i1 to i32
    %c0_i32_8 = arith.constant 0 : i32
    %11 = arith.cmpi ne, %10, %c0_i32_8 : i32
    scf.if %11 {
      %c0_9 = arith.constant 0 : index
      %c0_10 = arith.constant 0 : index
      %12 = vector.load %arg5[%c0_9, %c0_10] : memref<8x512xf32, #tpu.memory_space<vmem>>, vector<8x512xf32>
      %c0_11 = arith.constant 0 : index
      %c0_12 = arith.constant 0 : index
      %13 = vector.load %arg4[%c0_11, %c0_12] : memref<1x512xf32, #tpu.memory_space<vmem>>, vector<1x512xf32>
      %14 = vector.broadcast %13 : vector<1x512xf32> to vector<8x512xf32>
      %15 = arith.addf %12, %14 : vector<8x512xf32>
      %cst_13 = arith.constant 0.000000e+00 : f32
      %16 = vector.broadcast %cst_13 : f32 to vector<8x512xf32>
      %17 = arith.maximumf %15, %16 : vector<8x512xf32>
      %c0_14 = arith.constant 0 : index
      %c0_15 = arith.constant 0 : index
      %18 = vector.load %arg5[%c0_14, %c0_15] : memref<8x512xf32, #tpu.memory_space<vmem>>, vector<8x512xf32>
      tpu.vector_store %arg5[%c0_14, %c0_15], %17 {strides = array<i32>} : memref<8x512xf32, #tpu.memory_space<vmem>>, vector<8x512xf32>,
    } else {
    }
    return
  }
  func.func @transform_0(%arg0: i32, %arg1: i32) -> (i32, i32) {
    %c0_i32 = arith.constant 0 : i32
    %c0_i32_0 = arith.constant 0 : i32
    return %c0_i32, %arg1 : i32, i32
  }
  func.func @transform_1(%arg0: i32, %arg1: i32) -> (i32, i32) {
    %c0_i32 = arith.constant 0 : i32
    return %arg1, %arg0 : i32, i32
  }
  func.func @transform_2(%arg0: i32, %arg1: i32) -> (i32, i32) {
    %c0_i32 = arith.constant 0 : i32
    %c0_i32_0 = arith.constant 0 : i32
    return %c0_i32, %arg0 : i32, i32
  }
  func.func @transform_3(%arg0: i32, %arg1: i32) -> (i32, i32) {
    %c0_i32 = arith.constant 0 : i32
    %c0_i32_0 = arith.constant 0 : i32
    return %c0_i32, %arg0 : i32, i32
  }
}

</mosaic_0001>

<bundles_post_ra>
// kernel: tpu_custom_call.1
= control target key start
LH: loop header
LB: loop body
LE: loop exit
PB: predicated region body
PF: predicated region fallthrough
CT: control target
= control target key end

     0   :  { %s4215_s0 = inlined_call_operand.hbm [shape: bf16[8,2048], index: 0, kind: input, shape index: {}]   ;;  %s4216_s1 = inlined_call_operand.hbm [shape: bf16[2048,1024], index: 1, kind: input, shape index: {}]   ;;  %s4217_s2 = inlined_call_operand.hbm [shape: f32[1,1024], index: 2, kind: input, shape index: {}]   ;;  %s4218_s3 = inlined_call_operand.hbm [shape: f32[8,1024], index: 3, kind: output, shape index: {}]  }
   0x1   :  { %4231 = sst [smem:[#allocation19_spill]] %s4215_s0 }
   0x2   :  { %4232 = sst [smem:[#allocation20_spill]] %s4216_s1 }
   0x3   :  { %4233 = sst [smem:[#allocation21_spill]] %s4218_s3 }
   0x4   :  { %8 = vsyncpa [#allocation3], 0 }
   0x5   :  { %10 = vsyncpa [#allocation3 + $0x1], 0 }
   0x6   :  { %11 = vsyncpa [#allocation6], 0 }
   0x7   :  { %13 = vsyncpa [#allocation6 + $0x1], 0 }
   0x8   :  { %14 = vsyncpa [#allocation4], 0 }
   0x9   :  { %16 = vsyncpa [#allocation4 + $0x1], 0  ;;  %s3485_s12 = smov 0   ;;  %s3487_s13 = smov 0  }
   0xa   :  { %s3489_s14 = smov 0   ;;  %s3491_s15 = smov 0  }
   0xb   :  { %s3493_s16 = smov 0   ;;  %s3495_s17 = smov 0  }
   0xc   :  { %s3497_s18 = smov 0   ;;  %s3499_s19 = smov 0  }
   0xd   :  { %s3501_s20 = smov 0   ;;  %s3503_s21 = smov 0  }
   0xe   :  { %s3505_s22 = smov 0   ;;  %s3507_s23 = smov 0  }
   0xf   :  { %s3509_s24 = smov 0   ;;  %s3511_s25 = smov 0  }
  0x10 LB: > { %4234 = sst [smem:[#allocation13_spill]] %s3435_s20  ;;  %p4220_p0 = scmp.eq.s32.totalorder %s3455_s25, 0  ;;  %s3455_s25 = sphi %s3511_s25, %s22_s25   ;;  %s3451_s24 = sphi %s3509_s24, %s4275_s24   ;;  %s3447_s23 = sphi %s3507_s23, %s4285_s23   ;;  %s3443_s22 = sphi %s3505_s22, %s4273_s22   ;;  %s3439_s21 = sphi %s3503_s21, %s4284_s21   ;;  %s3435_s20 = sphi %s3501_s20, %s4272_s20   ;;  %s3431_s19 = sphi %s3499_s19, %s4283_s19   ;;  %s3427_s18 = sphi %s3497_s18, %s4282_s18   ;;  %s3423_s17 = sphi %s3495_s17, %s4281_s17   ;;  %s3419_s16 = sphi %s3493_s16, %s4280_s16   ;;  %s3415_s15 = sphi %s3491_s15, %s4279_s15   ;;  %s3411_s14 = sphi %s3489_s14, %s4278_s14   ;;  %s3407_s13 = sphi %s3487_s13, %s4277_s13   ;;  %s3403_s12 = sphi %s3485_s12, %s4276_s12  }
  0x11   : > { %4235 = sst [smem:[#allocation14_spill]] %s3443_s22  ;;  %p76_p1 = scmp.ne.s32.totalorder %s3423_s17, %s3419_s16 }
  0x12   : > { %4236 = sst [smem:[#allocation15_spill]] %s3451_s24  ;;  %p4219_p4 = scmp.lt.s32.totalorder %s3455_s25, 4 }
  0x13   : > { %p78_p3 = por %p76_p1, %p4220_p0  ;;  %s177_s28 = sand.u32 1, %s3455_s25  }
  0x14   : > { %s179_s29 = sand.u32 1, %s3423_s17   ;;  %s2393_s4 = sshll.u32 %s3451_s24, 2 }
  0x15   : > { %s2391_s30 = sshll.u32 %s179_s29, 11  ;;  %s2676_s5 = sshll.u32 %s3447_s23, 10 }
  0x16   : > { %s181_s6 = scalar_lea.vmem [#allocation5], %s2391_s30  ;;  %s188_s8 = sadd.s32 %s2676_s5, %s2393_s4 }
  0x17   : > { %s191_s7 = sshll.u32 %s181_s6, 4  ;;  %s2395_s9 = sshll.u32 %s188_s8, 6  ;;  %s3569_s7 = int_to_ptr.vmem [resolvable:$true] %s191_s7 }
  0x18   : > { %p3573_p5 = pnand %p4219_p4, %p78_p3  ;;  %s4238_s1 = sld [smem:[#allocation20_spill]] }
  0x19   : > { %p2399_p6 = scmp.ge.s32.totalorder %s3455_s25, 1  ;;  %s3583_s29 = scalar_lea.sflag [#allocation6], %s177_s28 }
  0x1a   : > { %p3213_p8 = pneg %p3573_p5 }
  0x1e   : > { %s3580_s26 = scalar_lea.hbm %s4238_s1, %s2395_s9  ;;  %s3216_s5 = scalar_lea.hbm %s4238_s1, 131072 }
  0x1f   : > { %s3211_s30 = scalar_lea.hbm %s3580_s26, 32768  ;;  %p3217_p11 = scmp.lt.u32.totalorder %s3580_s26, %s4238_s1 }
  0x20   : > { %p3212_p7 = scmp.ne.s32.totalorder %s3580_s26, %s3211_s30  ;;  %p3218_p12 = scmp.lt.u32.totalorder %s3216_s5, %s3211_s30 }
  0x21   : > { %p3220_p1 = scmp.lt.u32.totalorder %s3211_s30, %s3580_s26 }
  0x22   : > { %p3214_p9 = pnand %p3213_p8, %p3212_p7  ;;  %p3219_p13 = por %p3218_p12, %p3217_p11 }
  0x24   : > { %p3215_p10 = pneg %p3214_p9  ;;  %p3221_p3 = por %p3220_p1, %p3219_p13 }
  0x26   : > { %p3222_p4 = pnand %p3221_p3, %p3215_p10 }
  0x28   : > { %3225 = shalt.err (!%p3222_p4)
}
  0x29   : > { %s3226_s28 = scalar_lea.vmem %s3569_s7, 32768  ;;  %s3457_s9 = smov [#allocation5]  }
  0x2a   : > { %p3227_p7 = scmp.ne.s32.totalorder %s3569_s7, %s3226_s28  ;;  %s3231_s11 = sshll.u32 %s3457_s9, 4  ;;  %s3232_s11 = int_to_ptr.vmem [resolvable:$false] %s3231_s11 }
  0x2b   : > { %s3233_s27 = scalar_lea.vmem %s3232_s11, 65536  ;;  %p3234_p0 = scmp.lt.s32.totalorder %s3569_s7, %s3232_s11 }
  0x2c   : > { %p3229_p9 = pnand %p3227_p7, %p3213_p8  ;;  %p3235_p11 = scmp.lt.s32.totalorder %s3233_s27, %s3226_s28 }
  0x2e   : > { %p3230_p2 = pneg %p3229_p9  ;;  %p3236_p12 = por %p3235_p11, %p3234_p0 }
  0x30   : > { %p3237_p13 = pnand %p3236_p12, %p3230_p2 }
  0x32   : > { %3240 = shalt.err (!%p3237_p13)
}
  0x33   : > { %s3458_s30 = smov 512   ;;  %s3459_s4 = smov 256  }
  0x34   : > { %s3460_s5 = smov 16   ;;  %p218_p0 = scmp.lt.s32.totalorder %s3455_s25, 5 }
  0x35   : > { %2693 = dma.hbm_to_vmem [thread:$0]  (!%p3573_p5), %s3580_s26, 32768, %s3569_s7, %s3583_s29, %s3458_s30, %s3459_s4, %s3460_s5  }
  0x36   : > { %p3614_p2 = pnand %p2399_p6, %p218_p0  ;;  %s3619_s8 = sadd.s32 4294967295, %s3455_s25  }
  0x37   : > { %s31_s28 = sadd.s32 1, %s3447_s23  ;;  %s41_s9 = sadd.s32 1, %s3435_s20 }
  0x38   : > { %s4239_s6 = scalar_select %p3614_p2, 1, 0 }
  0x39   : > { %p32_p4 = scmp.ge.s32.totalorder %s31_s28, 2  ;;  %p48_p5 = scmp.ne.s32.totalorder %s3435_s20, %s3431_s19 }
  0x3a   : > { %p54_p8 = scmp.ne.s32.totalorder %s3431_s19, %s3427_s18  ;;  %s4241_s26 = sadd.s32 1, %s3451_s24 }
  0x3b   : > { %s4287_s28 = smov (%p32_p4, %s31_s28), 0  ;;  %s4289_s26 = smov (!%p32_p4, %s4241_s26), %s3451_s24 }
  0x3c   : > { %4240 = sst [smem:[#allocation16_spill]] %s4287_s28  ;;  %s38_s7 = ssub.s32 %s3447_s23, %s4287_s28 }
  0x3d   : > { %p4242_p6 = scmp.eq.s32.totalorder %s3455_s25, 0  ;;  %p36_p1 = scmp.ge.s32.totalorder %s4289_s26, 2 }
  0x3e   : > { %p39_p3 = scmp.eq.s32.totalorder %s38_s7, 0  ;;  %p4224_p7 = scmp.eq.s32.totalorder %s3619_s8, 0 }
  0x3f   : > { %p3636_p10 = por %p4242_p6, %p48_p5  ;;  %s158_s18 = sand.u32 1, %s3435_s20  }
  0x40   : > { %s4291_s26 = smov (%p36_p1, %s4289_s26), 0  ;;  %p3649_p9 = por %p4224_p7, %p54_p8 }
  0x41   : > { %4244 = sst [smem:[#allocation17_spill]] %s4291_s26  ;;  %s3655_s30 = ssub.s32 %s3451_s24, %s4291_s26 }
  0x42   : > { %s3645_s11 = scalar_select %p39_p3, %s3435_s20, %s41_s9  }
  0x43   : > { %s4246_s27 = scalar_select %p3649_p9, 1, 0 }
  0x44   : > { %4245 = sst [smem:[#allocation18_spill]] %s3645_s11  ;;  %s66_s4 = sor.u32 %s3655_s30, %s38_s7 }
  0x45   : > { %p4247_p11 = scmp.ne.s32.totalorder %s3419_s16, %s3415_s15  ;;  %p67_p13 = scmp.eq.s32.totalorder %s66_s4, 0 }
  0x46   : > { %s2388_s1 = sshll.u32 %s158_s18, 5  ;;  %s2675_s28 = sshll.u32 %s3447_s23, 9 }
  0x47   : > { %p3663_p12 = por %p4247_p11, %p4224_p7  ;;  %s4249_s9 = sadd.s32 1, %s3423_s17 }
  0x48   : > { %s3671_s11 = scalar_select %p67_p13, %s3423_s17, %s4249_s9  }
  0x49   : > { %s4248_s5 = scalar_select %p3663_p12, 1, 0 }
  0x4a   : > { %s4250_s0 = sld [smem:[#allocation19_spill]]  ;;  %s162_s15 = scalar_lea.vmem [#allocation2], %s2388_s1 }
  0x4b   : > { %s170_s7 = sshll.u32 %s162_s15, 4  ;;  %p4251_p0 = scmp.lt.s32.totalorder %s3455_s25, 4  ;;  %s3686_s7 = int_to_ptr.vmem [resolvable:$true] %s170_s7 }
  0x4c   : > { %s159_s9 = scalar_lea.sflag [#allocation3], %s158_s18 }
  0x4d   : > { %p3682_p4 = pnand %p4251_p0, %p3636_p10 }
  0x4f   : > { %p3243_p8 = pneg %p3682_p4 }
  0x50   : > { %s3676_s22 = scalar_lea.hbm %s4250_s0, %s2675_s28  ;;  %s3246_s28 = scalar_lea.hbm %s4250_s0, 1024 }
  0x51   : > { %s3241_s3 = scalar_lea.hbm %s3676_s22, 512  ;;  %p3247_p10 = scmp.lt.u32.totalorder %s3676_s22, %s4250_s0 }
  0x52   : > { %p3242_p5 = scmp.ne.s32.totalorder %s3676_s22, %s3241_s3  ;;  %p3248_p3 = scmp.lt.u32.totalorder %s3246_s28, %s3241_s3 }
  0x53   : > { %p3250_p13 = scmp.lt.u32.totalorder %s3241_s3, %s3676_s22 }
  0x54   : > { %p3244_p6 = pnand %p3243_p8, %p3242_p5  ;;  %p3249_p11 = por %p3248_p3, %p3247_p10 }
  0x56   : > { %p3245_p1 = pneg %p3244_p6  ;;  %p3251_p0 = por %p3250_p13, %p3249_p11 }
  0x58   : > { %p3252_p7 = pnand %p3251_p0, %p3245_p1 }
  0x5a   : > { %3255 = shalt.err (!%p3252_p7)
}
  0x5b   : > { %s3256_s18 = scalar_lea.vmem %s3686_s7, 512  ;;  %s3461_s1 = smov [#allocation2]  }
  0x5c   : > { %p3257_p5 = scmp.ne.s32.totalorder %s3686_s7, %s3256_s18  ;;  %s3261_s20 = sshll.u32 %s3461_s1, 4  ;;  %s3262_s20 = int_to_ptr.vmem [resolvable:$false] %s3261_s20 }
  0x5d   : > { %s3263_s10 = scalar_lea.vmem %s3262_s20, 1024  ;;  %p3264_p9 = scmp.lt.s32.totalorder %s3686_s7, %s3262_s20 }
  0x5e   : > { %p3259_p6 = pnand %p3257_p5, %p3243_p8  ;;  %p3265_p10 = scmp.lt.s32.totalorder %s3263_s10, %s3256_s18 }
  0x60   : > { %p3260_p12 = pneg %p3259_p6  ;;  %p3266_p3 = por %p3265_p10, %p3264_p9 }
  0x62   : > { %p3267_p11 = pnand %p3266_p3, %p3260_p12 }
  0x64   : > { %3270 = shalt.err (!%p3267_p11)
}
  0x65   : > { %2690 = dma.hbm_to_vmem [thread:$0]  (!%p3682_p4), %s3676_s22, 512, %s3686_s7, %s159_s9  }
  0x66   : > { %s2385_s3 = sadd.s32 4294967294, %s3455_s25   ;;  %p93_p7 = scmp.eq.s32.totalorder %s3655_s30, 0 }
  0x67   : > { %s95_s28 = sadd.s32 1, %s3411_s14  ;;  %p102_p9 = scmp.ne.s32.totalorder %s3411_s14, %s3407_s13 }
  0x68   : > { %s3719_s4 = scalar_select %p93_p7, %s3411_s14, %s95_s28  }
  0x69   : > { %p4253_p12 = scmp.eq.s32.totalorder %s3455_s25, 0  ;;  %p108_p1 = scmp.ne.s32.totalorder %s3407_s13, %s3403_s12 }
  0x6a   : > { %p132_p13 = scmp.eq.s32.totalorder %s3619_s8, 3  ;;  %p138_p0 = scmp.eq.s32.totalorder %s2385_s3, 3 }
  0x6b   : > { %p3723_p8 = por %p102_p9, %p4253_p12  ;;  %p4255_p5 = scmp.eq.s32.totalorder %s3619_s8, 0 }
  0x6c   : > { %s203_s22 = sand.u32 1, %s3411_s14   ;;  %p3737_p4 = por %p132_p13, %p102_p9 }
  0x6d   : > { %p3732_p6 = por %p108_p1, %p4255_p5  ;;  %p3741_p10 = por %p138_p0, %p108_p1 }
  0x6e   : > { %s4257_s30 = scalar_select %p3737_p4, 1, 0 }
  0x6f   : > { %s4256_s18 = scalar_select %p3732_p6, 1, 0 }
  0x70   : > { %s4258_s7 = scalar_select %p3741_p10, 1, 0 }
  0x71   : > { %s2396_s9 = sshll.u32 %s203_s22, 2  ;;  %s2677_s1 = sshll.u32 %s3451_s24, 6 }
  0x72   : > { %s3749_s3 = scalar_lea.hbm %s4217_s2, %s2677_s1  ;;  %s205_s28 = scalar_lea.vmem [#allocation7], %s2396_s9 }
  0x73   : > { %s213_s0 = sshll.u32 %s205_s28, 4  ;;  %p4259_p3 = scmp.lt.s32.totalorder %s3455_s25, 4  ;;  %s214_s0 = int_to_ptr.vmem [resolvable:$true] %s213_s0 }
  0x74   : > { %s3271_s22 = scalar_lea.hbm %s3749_s3, 64  ;;  %s3276_s15 = scalar_lea.hbm %s4217_s2, 128 }
  0x75   : > { %p3755_p11 = pnand %p4259_p3, %p3723_p8  ;;  %p3272_p7 = scmp.ne.s32.totalorder %s3749_s3, %s3271_s22 }
  0x76   : > { %p3277_p8 = scmp.lt.u32.totalorder %s3749_s3, %s4217_s2  ;;  %p3278_p13 = scmp.lt.u32.totalorder %s3276_s15, %s3271_s22 }
  0x77   : > { %p3273_p9 = pneg %p3755_p11  ;;  %p3280_p5 = scmp.lt.u32.totalorder %s3271_s22, %s3749_s3 }
  0x78   : > { %p3279_p0 = por %p3278_p13, %p3277_p8 }
  0x79   : > { %p3274_p12 = pnand %p3273_p9, %p3272_p7 }
  0x7a   : > { %p3281_p3 = por %p3280_p5, %p3279_p0 }
  0x7b   : > { %p3275_p1 = pneg %p3274_p12 }
  0x7d   : > { %p3282_p10 = pnand %p3281_p3, %p3275_p1 }
  0x7f   : > { %3285 = shalt.err (!%p3282_p10)
}
  0x80   : > { %s3286_s28 = scalar_lea.vmem %s214_s0, 64  ;;  %s3462_s24 = smov [#allocation7]  }
  0x81   : > { %p3287_p4 = scmp.ne.s32.totalorder %s214_s0, %s3286_s28  ;;  %s3291_s1 = sshll.u32 %s3462_s24, 4  ;;  %s3292_s1 = int_to_ptr.vmem [resolvable:$false] %s3291_s1 }
  0x82   : > { %s3293_s9 = scalar_lea.vmem %s3292_s1, 128  ;;  %p3294_p6 = scmp.lt.s32.totalorder %s214_s0, %s3292_s1 }
  0x83   : > { %p3289_p7 = pnand %p3287_p4, %p3273_p9  ;;  %p3295_p2 = scmp.lt.s32.totalorder %s3293_s9, %s3286_s28 }
  0x85   : > { %p3290_p12 = pneg %p3289_p7  ;;  %p3296_p8 = por %p3295_p2, %p3294_p6 }
  0x87   : > { %p3297_p13 = pnand %p3296_p8, %p3290_p12 }
  0x89   : > { %3300 = shalt.err (!%p3297_p13)
}
  0x8a   : > { %2696 = dma.hbm_to_vmem [thread:$0]  (!%p3755_p11), %s3749_s3, 64, %s214_s0, %s3583_s29  }
  0x8b   : > { %p4261_p10 = scmp.ne.s32.totalorder %s4239_s6, 0 }
  0x8c   : > { %s224_s22 = sand.u32 (!%p4261_p10), 1, %s3431_s19   ;;  %p4262_p4 = scmp.ne.s32.totalorder (!%p4261_p10), %s4246_s27, 0 }
  0x8d   : > { %222 = sbr.rel (%p4261_p10) target bundleno = 683 (0x2ab), region = 32  ;;  %s2400_s15 = sshll.u32 (!%p4261_p10), %s224_s22, 5 }
  0x8e   : > { %s225_s24 = scalar_lea.sflag (!%p4261_p10), [#allocation3], %s224_s22  ;;  %s3784_s20 = scalar_lea.vmem (!%p4261_p10), [#allocation2], %s2400_s15 }
  0x94   : > { %3386 = dma.done.wait (%p4262_p4), %s225_s24, 512  }
  0x95   : > { %3388 = vsyncadd (%p4262_p4), %s225_s24, 4294966784  ;;  %s233_s26 = sand.u32 1, %s3619_s8   ;;  %s235_s0 = sand.u32 1, %s3419_s16  }
  0x96   : > { %s2401_s29 = sshll.u32 %s235_s0, 11  ;;  %s234_s6 = scalar_lea.sflag [#allocation6], %s233_s26 }
  0x97   : > { %s3792_s3 = scalar_lea.vmem [#allocation5], %s2401_s29  ;;  %p4263_p2 = scmp.ne.s32.totalorder %s4248_s5, 0 }
  0x99   : > { %3390 = dma.done.wait (%p4263_p2), %s234_s6, 32768  }
  0x9a   : > { %3392 = vsyncadd (%p4263_p2), %s234_s6, 4294934528  ;;  %s3799_s10 = sand.u32 1, %s3407_s13   ;;  %p4264_p6 = scmp.ne.s32.totalorder %s4256_s18, 0 }
  0x9b   : > { %s2402_s27 = sshll.u32 %s3799_s10, 2 }
  0x9c   : > { %s3802_s28 = scalar_lea.vmem [#allocation7], %s2402_s27 }
  0x9d   : > { %3394 = dma.done.wait (%p4264_p6), %s234_s6, 64  }
  0x9e   : > { %3396 = vsyncadd (%p4264_p6), %s234_s6, 4294967232  ;;  %s2403_s8 = sshll.u32 %s3799_s10, 5  ;;  %p2404_p11 = scmp.ne.s32.totalorder %s3439_s21, 0 }
  0x9f   : > { %s3809_s1 = scalar_lea.vmem [#allocation8], %s2403_s8  ;;  %v3463_v0 = vmov (!%p2404_p11), 0.0  }
  0xa0   : > { %287 = sbr.rel (%p2404_p11) target bundleno = 167 (0xa7), region = 48  ;;  %288 = vst [vmem:[%s3809_s1] sm:$0xff] (!%p2404_p11), %v3463_v0  ;;  %289 = vst [vmem:[%s3809_s1 + $0x8] sm:$0xff] (!%p2404_p11), %v3463_v0 }
  0xa1   : > { %290 = vst [vmem:[%s3809_s1 + $0x10] sm:$0xff] (!%p2404_p11), %v3463_v0  ;;  %291 = vst [vmem:[%s3809_s1 + $0x18] sm:$0xff] (!%p2404_p11), %v3463_v0 }
  0xa7 PF: > { %v2819_v1 = vld [vmem:[%s3792_s3 + $0x4] ss:$16 sps:$4 sm:$0xff]   ;;  %v2823_v3 = vld [vmem:[%s3792_s3] ss:$16 sps:$4 sm:$0xff]   ;;  %v297_v49 = vld [vmem:[%s3784_s20 + $0x8] sm:$0xff]  ;;  %p2669_p9 = scmp.ne.s32.totalorder %s3439_s21, 1 }
  0xa8   : > { %v2821_v2 = vld [vmem:[%s3792_s3 + $0x204] ss:$16 sps:$4 sm:$0xff]   ;;  %1864 = vmatprep.subr.bf16.mxu0 %v2819_v1  ;;  %v2824_v4 = vld [vmem:[%s3792_s3 + $0x200] ss:$16 sps:$4 sm:$0xff]   ;;  %v3868_v52 = vcombine.high %v297_v49, %v297_v49 }
  0xa9   : > { %1905 = vmatprep.subr.bf16.mxu1 %v2821_v2  ;;  %v2825_v5 = vld [vmem:[%s3792_s3 + $0x24] ss:$16 sps:$4 sm:$0xff]   ;;  %1865 = vmatpush1.bf16.msra.mxu0 %v2823_v3  ;;  %v2829_v7 = vld [vmem:[%s3792_s3 + $0x20] ss:$16 sps:$4 sm:$0xff]  }
  0xaa   : > { %1906 = vmatpush1.bf16.msra.mxu1 %v2824_v4  ;;  %v2827_v6 = vld [vmem:[%s3792_s3 + $0x224] ss:$16 sps:$4 sm:$0xff]   ;;  %1866 = vmatprep.subr.bf16.mxu0 %v2825_v5  ;;  %v2830_v8 = vld [vmem:[%s3792_s3 + $0x220] ss:$16 sps:$4 sm:$0xff]  }
  0xab   : > { %1907 = vmatprep.subr.bf16.mxu1 %v2827_v6  ;;  %v2831_v9 = vld [vmem:[%s3792_s3 + $0x44] ss:$16 sps:$4 sm:$0xff]   ;;  %v2835_v11 = vld [vmem:[%s3792_s3 + $0x40] ss:$16 sps:$4 sm:$0xff]   ;;  %1937 = vmatprep.mubr.bf16.mxu1 %v3868_v52 }
  0xac   : > { %v2833_v10 = vld [vmem:[%s3792_s3 + $0x244] ss:$16 sps:$4 sm:$0xff]   ;;  %v2836_v12 = vld [vmem:[%s3792_s3 + $0x240] ss:$16 sps:$4 sm:$0xff]  }
  0xad   : > { %1867 = vmatpush1.bf16.msra.mxu0 %v2829_v7  ;;  %v2837_v13 = vld [vmem:[%s3792_s3 + $0x64] ss:$16 sps:$4 sm:$0xff]   ;;  %v2841_v15 = vld [vmem:[%s3792_s3 + $0x60] ss:$16 sps:$4 sm:$0xff]  }
  0xae   : > { %1908 = vmatpush1.bf16.msra.mxu1 %v2830_v8  ;;  %1868 = vmatprep.subr.bf16.mxu0 %v2831_v9  ;;  %v2839_v14 = vld [vmem:[%s3792_s3 + $0x264] ss:$16 sps:$4 sm:$0xff]   ;;  %v2842_v16 = vld [vmem:[%s3792_s3 + $0x260] ss:$16 sps:$4 sm:$0xff]   ;;  %v3892_v8 = vcombine.low %v297_v49, %v297_v49 }
  0xaf   : > { %1909 = vmatprep.subr.bf16.mxu1 %v2833_v10  ;;  %v2843_v17 = vld [vmem:[%s3792_s3 + $0x84] ss:$16 sps:$4 sm:$0xff]   ;;  %v2847_v19 = vld [vmem:[%s3792_s3 + $0x80] ss:$16 sps:$4 sm:$0xff]  }
  0xb0   : > { %v2845_v18 = vld [vmem:[%s3792_s3 + $0x284] ss:$16 sps:$4 sm:$0xff]   ;;  %v2848_v20 = vld [vmem:[%s3792_s3 + $0x280] ss:$16 sps:$4 sm:$0xff]  }
  0xb1   : > { %1869 = vmatpush1.bf16.msra.mxu0 %v2835_v11  ;;  %v2849_v21 = vld [vmem:[%s3792_s3 + $0xa4] ss:$16 sps:$4 sm:$0xff]   ;;  %v2853_v23 = vld [vmem:[%s3792_s3 + $0xa0] ss:$16 sps:$4 sm:$0xff]  }
  0xb2   : > { %1910 = vmatpush1.bf16.msra.mxu1 %v2836_v12  ;;  %1870 = vmatprep.subr.bf16.mxu0 %v2837_v13  ;;  %v2851_v22 = vld [vmem:[%s3792_s3 + $0x2a4] ss:$16 sps:$4 sm:$0xff]   ;;  %v2854_v24 = vld [vmem:[%s3792_s3 + $0x2a0] ss:$16 sps:$4 sm:$0xff]  }
  0xb3   : > { %1911 = vmatprep.subr.bf16.mxu1 %v2839_v14  ;;  %v2855_v25 = vld [vmem:[%s3792_s3 + $0xc4] ss:$16 sps:$4 sm:$0xff]   ;;  %v2859_v27 = vld [vmem:[%s3792_s3 + $0xc0] ss:$16 sps:$4 sm:$0xff]  }
  0xb4   : > { %v2857_v26 = vld [vmem:[%s3792_s3 + $0x2c4] ss:$16 sps:$4 sm:$0xff]   ;;  %v2860_v28 = vld [vmem:[%s3792_s3 + $0x2c0] ss:$16 sps:$4 sm:$0xff]  }
  0xb5   : > { %1871 = vmatpush1.bf16.msra.mxu0 %v2841_v15  ;;  %v2861_v29 = vld [vmem:[%s3792_s3 + $0xe4] ss:$16 sps:$4 sm:$0xff]   ;;  %v2865_v31 = vld [vmem:[%s3792_s3 + $0xe0] ss:$16 sps:$4 sm:$0xff]  }
  0xb6   : > { %1912 = vmatpush1.bf16.msra.mxu1 %v2842_v16  ;;  %1872 = vmatprep.subr.bf16.mxu0 %v2843_v17  ;;  %v2863_v30 = vld [vmem:[%s3792_s3 + $0x2e4] ss:$16 sps:$4 sm:$0xff]   ;;  %v2866_v32 = vld [vmem:[%s3792_s3 + $0x2e0] ss:$16 sps:$4 sm:$0xff]  }
  0xb7   : > { %1913 = vmatprep.subr.bf16.mxu1 %v2845_v18  ;;  %v2867_v33 = vld [vmem:[%s3792_s3 + $0x104] ss:$16 sps:$4 sm:$0xff]   ;;  %v2871_v35 = vld [vmem:[%s3792_s3 + $0x100] ss:$16 sps:$4 sm:$0xff]  }
  0xb8   : > { %v2869_v34 = vld [vmem:[%s3792_s3 + $0x304] ss:$16 sps:$4 sm:$0xff]   ;;  %v2872_v36 = vld [vmem:[%s3792_s3 + $0x300] ss:$16 sps:$4 sm:$0xff]  }
  0xb9   : > { %1873 = vmatpush1.bf16.msra.mxu0 %v2847_v19  ;;  %v2873_v37 = vld [vmem:[%s3792_s3 + $0x124] ss:$16 sps:$4 sm:$0xff]   ;;  %v2877_v39 = vld [vmem:[%s3792_s3 + $0x120] ss:$16 sps:$4 sm:$0xff]  }
  0xba   : > { %1914 = vmatpush1.bf16.msra.mxu1 %v2848_v20  ;;  %1874 = vmatprep.subr.bf16.mxu0 %v2849_v21  ;;  %v2875_v38 = vld [vmem:[%s3792_s3 + $0x324] ss:$16 sps:$4 sm:$0xff]   ;;  %v2878_v40 = vld [vmem:[%s3792_s3 + $0x320] ss:$16 sps:$4 sm:$0xff]  }
  0xbb   : > { %1915 = vmatprep.subr.bf16.mxu1 %v2851_v22  ;;  %v2879_v41 = vld [vmem:[%s3792_s3 + $0x144] ss:$16 sps:$4 sm:$0xff]   ;;  %v2883_v43 = vld [vmem:[%s3792_s3 + $0x140] ss:$16 sps:$4 sm:$0xff]  }
  0xbc   : > { %v2881_v42 = vld [vmem:[%s3792_s3 + $0x344] ss:$16 sps:$4 sm:$0xff]   ;;  %v2884_v44 = vld [vmem:[%s3792_s3 + $0x340] ss:$16 sps:$4 sm:$0xff]  }
  0xbd   : > { %1875 = vmatpush1.bf16.msra.mxu0 %v2853_v23  ;;  %v2885_v45 = vld [vmem:[%s3792_s3 + $0x164] ss:$16 sps:$4 sm:$0xff]   ;;  %v2889_v50 = vld [vmem:[%s3792_s3 + $0x160] ss:$16 sps:$4 sm:$0xff]  }
  0xbe   : > { %1916 = vmatpush1.bf16.msra.mxu1 %v2854_v24  ;;  %1876 = vmatprep.subr.bf16.mxu0 %v2855_v25  ;;  %v2887_v46 = vld [vmem:[%s3792_s3 + $0x364] ss:$16 sps:$4 sm:$0xff]   ;;  %v2890_v51 = vld [vmem:[%s3792_s3 + $0x360] ss:$16 sps:$4 sm:$0xff]  }
  0xbf   : > { %1917 = vmatprep.subr.bf16.mxu1 %v2857_v26  ;;  %v296_v47 = vld [vmem:[%s3784_s20] sm:$0xff] }
  0xc0   : > { %v3863_v48 = vcombine.high %v296_v47, %v296_v47  ;;  %v2891_v53 = vld [vmem:[%s3792_s3 + $0x184] ss:$16 sps:$4 sm:$0xff]   ;;  %v2895_v55 = vld [vmem:[%s3792_s3 + $0x180] ss:$16 sps:$4 sm:$0xff]   ;;  %v3890_v7 = vcombine.low %v296_v47, %v296_v47 }
  0xc1   : > { %1877 = vmatpush1.bf16.msra.mxu0 %v2859_v27  ;;  %v2893_v54 = vld [vmem:[%s3792_s3 + $0x384] ss:$16 sps:$4 sm:$0xff]   ;;  %v2896_v56 = vld [vmem:[%s3792_s3 + $0x380] ss:$16 sps:$4 sm:$0xff]  }
  0xc2   : > { %1918 = vmatpush1.bf16.msra.mxu1 %v2860_v28  ;;  %1878 = vmatprep.subr.bf16.mxu0 %v2861_v29  ;;  %v2897_v57 = vld [vmem:[%s3792_s3 + $0x1a4] ss:$16 sps:$4 sm:$0xff]   ;;  %v2901_v59 = vld [vmem:[%s3792_s3 + $0x1a0] ss:$16 sps:$4 sm:$0xff]  }
  0xc3   : > { %1919 = vmatprep.subr.bf16.mxu1 %v2863_v30  ;;  %1896 = vmatprep.mubr.bf16.mxu0 %v3863_v48  ;;  %v2899_v58 = vld [vmem:[%s3792_s3 + $0x3a4] ss:$16 sps:$4 sm:$0xff]   ;;  %v2902_v60 = vld [vmem:[%s3792_s3 + $0x3a0] ss:$16 sps:$4 sm:$0xff]  }
  0xc4   : > { %v2903_v61 = vld [vmem:[%s3792_s3 + $0x1c4] ss:$16 sps:$4 sm:$0xff]   ;;  %v2907_v63 = vld [vmem:[%s3792_s3 + $0x1c0] ss:$16 sps:$4 sm:$0xff]  }
  0xc5   : > { %1879 = vmatpush1.bf16.msra.mxu0 %v2865_v31  ;;  %v2905_v62 = vld [vmem:[%s3792_s3 + $0x3c4] ss:$16 sps:$4 sm:$0xff]   ;;  %v2908_v0 = vld [vmem:[%s3792_s3 + $0x3c0] ss:$16 sps:$4 sm:$0xff]  }
  0xc6   : > { %1920 = vmatpush1.bf16.msra.mxu1 %v2866_v32  ;;  %1880 = vmatprep.subr.bf16.mxu0 %v2867_v33  ;;  %v2909_v1 = vld [vmem:[%s3792_s3 + $0x1e4] ss:$16 sps:$4 sm:$0xff]   ;;  %v2913_v3 = vld [vmem:[%s3792_s3 + $0x1e0] ss:$16 sps:$4 sm:$0xff]  }
  0xc7   : > { %1921 = vmatprep.subr.bf16.mxu1 %v2869_v34  ;;  %v2911_v2 = vld [vmem:[%s3792_s3 + $0x3e4] ss:$16 sps:$4 sm:$0xff]   ;;  %v2914_v4 = vld [vmem:[%s3792_s3 + $0x3e0] ss:$16 sps:$4 sm:$0xff]   ;;  %v3924_v34 = vld [vmem:[%s3784_s20 + $0x18] sm:$0xff] }
  0xc8   : > { %v2921_v5 = vld [vmem:[%s3792_s3 + $0x404] ss:$16 sps:$4 sm:$0xff]   ;;  %v2919_v9 = vld [vmem:[%s3792_s3 + $0x400] ss:$16 sps:$4 sm:$0xff]  }
  0xc9   : > { %1881 = vmatpush1.bf16.msra.mxu0 %v2871_v35  ;;  %v2924_v6 = vld [vmem:[%s3792_s3 + $0x604] ss:$16 sps:$4 sm:$0xff]   ;;  %v2922_v10 = vld [vmem:[%s3792_s3 + $0x600] ss:$16 sps:$4 sm:$0xff]  }
  0xca   : > { %1922 = vmatpush1.bf16.msra.mxu1 %v2872_v36  ;;  %1882 = vmatprep.subr.bf16.mxu0 %v2873_v37  ;;  %v2927_v11 = vld [vmem:[%s3792_s3 + $0x424] ss:$16 sps:$4 sm:$0xff]   ;;  %v2925_v13 = vld [vmem:[%s3792_s3 + $0x420] ss:$16 sps:$4 sm:$0xff]  }
  0xcb   : > { %1923 = vmatprep.subr.bf16.mxu1 %v2875_v38  ;;  %v2930_v12 = vld [vmem:[%s3792_s3 + $0x624] ss:$16 sps:$4 sm:$0xff]   ;;  %v2928_v14 = vld [vmem:[%s3792_s3 + $0x620] ss:$16 sps:$4 sm:$0xff]   ;;  %v3934_v38 = vcombine.high %v3924_v34, %v3924_v34 }
  0xcc   : > { %v2933_v15 = vld [vmem:[%s3792_s3 + $0x444] ss:$16 sps:$4 sm:$0xff]   ;;  %v2931_v17 = vld [vmem:[%s3792_s3 + $0x440] ss:$16 sps:$4 sm:$0xff]  }
  0xcd   : > { %1883 = vmatpush1.bf16.msra.mxu0 %v2877_v39  ;;  %v2936_v16 = vld [vmem:[%s3792_s3 + $0x644] ss:$16 sps:$4 sm:$0xff]   ;;  %v2934_v18 = vld [vmem:[%s3792_s3 + $0x640] ss:$16 sps:$4 sm:$0xff]  }
  0xce   : > { %1924 = vmatpush1.bf16.msra.mxu1 %v2878_v40  ;;  %1884 = vmatprep.subr.bf16.mxu0 %v2879_v41  ;;  %v2939_v19 = vld [vmem:[%s3792_s3 + $0x464] ss:$16 sps:$4 sm:$0xff]   ;;  %v2937_v21 = vld [vmem:[%s3792_s3 + $0x460] ss:$16 sps:$4 sm:$0xff]  }
  0xcf   : > { %1925 = vmatprep.subr.bf16.mxu1 %v2881_v42  ;;  %v2942_v20 = vld [vmem:[%s3792_s3 + $0x664] ss:$16 sps:$4 sm:$0xff]   ;;  %v2940_v22 = vld [vmem:[%s3792_s3 + $0x660] ss:$16 sps:$4 sm:$0xff]  }
  0xd0   : > { %v2945_v23 = vld [vmem:[%s3792_s3 + $0x484] ss:$16 sps:$4 sm:$0xff]   ;;  %v2943_v25 = vld [vmem:[%s3792_s3 + $0x480] ss:$16 sps:$4 sm:$0xff]  }
  0xd1   : > { %1885 = vmatpush1.bf16.msra.mxu0 %v2883_v43  ;;  %v2948_v24 = vld [vmem:[%s3792_s3 + $0x684] ss:$16 sps:$4 sm:$0xff]   ;;  %v2946_v26 = vld [vmem:[%s3792_s3 + $0x680] ss:$16 sps:$4 sm:$0xff]  }
  0xd2   : > { %1926 = vmatpush1.bf16.msra.mxu1 %v2884_v44  ;;  %1886 = vmatprep.subr.bf16.mxu0 %v2885_v45  ;;  %v2951_v27 = vld [vmem:[%s3792_s3 + $0x4a4] ss:$16 sps:$4 sm:$0xff]   ;;  %v2949_v29 = vld [vmem:[%s3792_s3 + $0x4a0] ss:$16 sps:$4 sm:$0xff]  }
  0xd3   : > { %1927 = vmatprep.subr.bf16.mxu1 %v2887_v46  ;;  %v2954_v28 = vld [vmem:[%s3792_s3 + $0x6a4] ss:$16 sps:$4 sm:$0xff]   ;;  %v2952_v30 = vld [vmem:[%s3792_s3 + $0x6a0] ss:$16 sps:$4 sm:$0xff]  }
  0xd4   : > { %v2957_v31 = vld [vmem:[%s3792_s3 + $0x4c4] ss:$16 sps:$4 sm:$0xff]   ;;  %v2955_v35 = vld [vmem:[%s3792_s3 + $0x4c0] ss:$16 sps:$4 sm:$0xff]  }
  0xd5   : > { %1887 = vmatpush1.bf16.msra.mxu0 %v2889_v50  ;;  %v2960_v32 = vld [vmem:[%s3792_s3 + $0x6c4] ss:$16 sps:$4 sm:$0xff]   ;;  %v2958_v36 = vld [vmem:[%s3792_s3 + $0x6c0] ss:$16 sps:$4 sm:$0xff]  }
  0xd6   : > { %1928 = vmatpush1.bf16.msra.mxu1 %v2890_v51  ;;  %1888 = vmatprep.subr.bf16.mxu0 %v2891_v53  ;;  %v3921_v33 = vld [vmem:[%s3784_s20 + $0x10] sm:$0xff] }
  0xd7   : > { %1929 = vmatprep.subr.bf16.mxu1 %v2893_v54  ;;  %v3930_v37 = vcombine.high %v3921_v33, %v3921_v33  ;;  %v2963_v39 = vld [vmem:[%s3792_s3 + $0x4e4] ss:$16 sps:$4 sm:$0xff]   ;;  %v2961_v41 = vld [vmem:[%s3792_s3 + $0x4e0] ss:$16 sps:$4 sm:$0xff]  }
  0xd8   : > { %v2966_v40 = vld [vmem:[%s3792_s3 + $0x6e4] ss:$16 sps:$4 sm:$0xff]   ;;  %v2964_v42 = vld [vmem:[%s3792_s3 + $0x6e0] ss:$16 sps:$4 sm:$0xff]  }
  0xd9   : > { %1889 = vmatpush1.bf16.msra.mxu0 %v2895_v55  ;;  %v2969_v43 = vld [vmem:[%s3792_s3 + $0x504] ss:$16 sps:$4 sm:$0xff]   ;;  %v2967_v45 = vld [vmem:[%s3792_s3 + $0x500] ss:$16 sps:$4 sm:$0xff]  }
  0xda   : > { %1930 = vmatpush1.bf16.msra.mxu1 %v2896_v56  ;;  %1890 = vmatprep.subr.bf16.mxu0 %v2897_v57  ;;  %v2972_v44 = vld [vmem:[%s3792_s3 + $0x704] ss:$16 sps:$4 sm:$0xff]   ;;  %v2970_v46 = vld [vmem:[%s3792_s3 + $0x700] ss:$16 sps:$4 sm:$0xff]  }
  0xdb   : > { %1931 = vmatprep.subr.bf16.mxu1 %v2899_v58  ;;  %v2975_v47 = vld [vmem:[%s3792_s3 + $0x524] ss:$16 sps:$4 sm:$0xff]   ;;  %v2973_v50 = vld [vmem:[%s3792_s3 + $0x520] ss:$16 sps:$4 sm:$0xff]  }
  0xdc   : > { %v2978_v49 = vld [vmem:[%s3792_s3 + $0x724] ss:$16 sps:$4 sm:$0xff]   ;;  %v2976_v51 = vld [vmem:[%s3792_s3 + $0x720] ss:$16 sps:$4 sm:$0xff]  }
  0xdd   : > { %1891 = vmatpush1.bf16.msra.mxu0 %v2901_v59  ;;  %v2981_v53 = vld [vmem:[%s3792_s3 + $0x544] ss:$16 sps:$4 sm:$0xff]   ;;  %v2979_v55 = vld [vmem:[%s3792_s3 + $0x540] ss:$16 sps:$4 sm:$0xff]  }
  0xde   : > { %1932 = vmatpush1.bf16.msra.mxu1 %v2902_v60  ;;  %1892 = vmatprep.subr.bf16.mxu0 %v2903_v61  ;;  %v2984_v54 = vld [vmem:[%s3792_s3 + $0x744] ss:$16 sps:$4 sm:$0xff]   ;;  %v2982_v56 = vld [vmem:[%s3792_s3 + $0x740] ss:$16 sps:$4 sm:$0xff]  }
  0xdf   : > { %1933 = vmatprep.subr.bf16.mxu1 %v2905_v62  ;;  %v2987_v57 = vld [vmem:[%s3792_s3 + $0x564] ss:$16 sps:$4 sm:$0xff]   ;;  %v2985_v59 = vld [vmem:[%s3792_s3 + $0x560] ss:$16 sps:$4 sm:$0xff]  }
  0xe0   : > { %v2990_v58 = vld [vmem:[%s3792_s3 + $0x764] ss:$16 sps:$4 sm:$0xff]   ;;  %v2988_v60 = vld [vmem:[%s3792_s3 + $0x760] ss:$16 sps:$4 sm:$0xff]  }
  0xe1   : > { %1893 = vmatpush1.bf16.msra.mxu0 %v2907_v63  ;;  %v2993_v61 = vld [vmem:[%s3792_s3 + $0x584] ss:$16 sps:$4 sm:$0xff]   ;;  %v2991_v63 = vld [vmem:[%s3792_s3 + $0x580] ss:$16 sps:$4 sm:$0xff]  }
  0xe2   : > { %1934 = vmatpush1.bf16.msra.mxu1 %v2908_v0  ;;  %1894 = vmatprep.subr.bf16.mxu0 %v2909_v1  ;;  %v2996_v62 = vld [vmem:[%s3792_s3 + $0x784] ss:$16 sps:$4 sm:$0xff]   ;;  %v2994_v0 = vld [vmem:[%s3792_s3 + $0x780] ss:$16 sps:$4 sm:$0xff]  }
  0xe3   : > { %1935 = vmatprep.subr.bf16.mxu1 %v2911_v2  ;;  %v2999_v1 = vld [vmem:[%s3792_s3 + $0x5a4] ss:$16 sps:$4 sm:$0xff]  }
  0xe4   : > { %v3002_v2 = vld [vmem:[%s3792_s3 + $0x7a4] ss:$16 sps:$4 sm:$0xff]  }
  0xe5   : > { %1895 = vmatpush1.bf16.msra.mxu0 %v2913_v3  ;;  %v2997_v3 = vld [vmem:[%s3792_s3 + $0x5a0] ss:$16 sps:$4 sm:$0xff]  }
  0xe6   : > { %1936 = vmatpush1.bf16.msra.mxu1 %v2914_v4  ;;  %1946 = vmatprep.subr.bf16.mxu0 %v2921_v5  ;;  %v3000_v4 = vld [vmem:[%s3792_s3 + $0x7a0] ss:$16 sps:$4 sm:$0xff]   ;;  %v3005_v5 = vld [vmem:[%s3792_s3 + $0x5c4] ss:$16 sps:$4 sm:$0xff]  }
  0xe7   : > { %1987 = vmatprep.subr.bf16.mxu1 %v2924_v6  ;;  %v3008_v6 = vld [vmem:[%s3792_s3 + $0x7c4] ss:$16 sps:$4 sm:$0xff]  }
  0xe8   : > { %1897 = vmatmul.mubr.bf16.vlgmr.msra.gmra.mrb[0].mxu0 %v3890_v7 }
  0xe9   : > { %1938 = vmatmul.mubr.bf16.vlgmr.msra.gmra.mrb[0].mxu1 %v3892_v8  ;;  %1947 = vmatpush1.bf16.msra.mxu0 %v2919_v9  ;;  %v3003_v9 = vld [vmem:[%s3792_s3 + $0x5c0] ss:$16 sps:$4 sm:$0xff]  }
  0xea   : > { %1988 = vmatpush1.bf16.msra.mxu1 %v2922_v10  ;;  %1948 = vmatprep.subr.bf16.mxu0 %v2927_v11  ;;  %v3006_v10 = vld [vmem:[%s3792_s3 + $0x7c0] ss:$16 sps:$4 sm:$0xff]   ;;  %v3011_v11 = vld [vmem:[%s3792_s3 + $0x5e4] ss:$16 sps:$4 sm:$0xff]  }
  0xeb   : > { %1989 = vmatprep.subr.bf16.mxu1 %v2930_v12  ;;  %1978 = vmatprep.mubr.bf16.mxu0 %v3930_v37  ;;  %v3014_v12 = vld [vmem:[%s3792_s3 + $0x7e4] ss:$16 sps:$4 sm:$0xff]  }
  0xec   : > { %2019 = vmatprep.mubr.bf16.mxu1 %v3934_v38 }
  0xed   : > { %1949 = vmatpush1.bf16.msra.mxu0 %v2925_v13  ;;  %v3009_v13 = vld [vmem:[%s3792_s3 + $0x5e0] ss:$16 sps:$4 sm:$0xff]  }
  0xee   : > { %1990 = vmatpush1.bf16.msra.mxu1 %v2928_v14  ;;  %1950 = vmatprep.subr.bf16.mxu0 %v2933_v15  ;;  %v3012_v14 = vld [vmem:[%s3792_s3 + $0x7e0] ss:$16 sps:$4 sm:$0xff]   ;;  %v3021_v15 = vld [vmem:[%s3792_s3 + $0xc] ss:$16 sps:$4 sm:$0xff]  }
  0xef   : > { %1991 = vmatprep.subr.bf16.mxu1 %v2936_v16  ;;  %v3024_v16 = vld [vmem:[%s3792_s3 + $0x20c] ss:$16 sps:$4 sm:$0xff]  }
  0xf1   : > { %1951 = vmatpush1.bf16.msra.mxu0 %v2931_v17  ;;  %v3978_v17 = vcombine.low %v3921_v33, %v3921_v33  ;;  %v3043_v33 = vld [vmem:[%s3792_s3 + $0x88] ss:$16 sps:$4 sm:$0xff]  }
  0xf2   : > { %1992 = vmatpush1.bf16.msra.mxu1 %v2934_v18  ;;  %1952 = vmatprep.subr.bf16.mxu0 %v2939_v19  ;;  %v3982_v18 = vcombine.low %v3924_v34, %v3924_v34  ;;  %v3019_v19 = vld [vmem:[%s3792_s3 + $0x8] ss:$16 sps:$4 sm:$0xff]  }
  0xf3   : > { %1993 = vmatprep.subr.bf16.mxu1 %v2942_v20  ;;  %v3022_v20 = vld [vmem:[%s3792_s3 + $0x208] ss:$16 sps:$4 sm:$0xff]  }
  0xf4   : > { %v3046_v34 = vld [vmem:[%s3792_s3 + $0x288] ss:$16 sps:$4 sm:$0xff]  }
  0xf5   : > { %1953 = vmatpush1.bf16.msra.mxu0 %v2937_v21  ;;  %v3027_v21 = vld [vmem:[%s3792_s3 + $0x2c] ss:$16 sps:$4 sm:$0xff]  }
  0xf6   : > { %1994 = vmatpush1.bf16.msra.mxu1 %v2940_v22  ;;  %1954 = vmatprep.subr.bf16.mxu0 %v2945_v23  ;;  %v3030_v22 = vld [vmem:[%s3792_s3 + $0x22c] ss:$16 sps:$4 sm:$0xff]   ;;  %v3025_v23 = vld [vmem:[%s3792_s3 + $0x28] ss:$16 sps:$4 sm:$0xff]  }
  0xf7   : > { %1995 = vmatprep.subr.bf16.mxu1 %v2948_v24  ;;  %v3028_v24 = vld [vmem:[%s3792_s3 + $0x228] ss:$16 sps:$4 sm:$0xff]  }
  0xf9   : > { %1955 = vmatpush1.bf16.msra.mxu0 %v2943_v25  ;;  %v3033_v25 = vld [vmem:[%s3792_s3 + $0x4c] ss:$16 sps:$4 sm:$0xff]  }
  0xfa   : > { %1996 = vmatpush1.bf16.msra.mxu1 %v2946_v26  ;;  %1956 = vmatprep.subr.bf16.mxu0 %v2951_v27  ;;  %v3036_v26 = vld [vmem:[%s3792_s3 + $0x24c] ss:$16 sps:$4 sm:$0xff]   ;;  %v3031_v27 = vld [vmem:[%s3792_s3 + $0x48] ss:$16 sps:$4 sm:$0xff]  }
  0xfb   : > { %1997 = vmatprep.subr.bf16.mxu1 %v2954_v28  ;;  %v3034_v28 = vld [vmem:[%s3792_s3 + $0x248] ss:$16 sps:$4 sm:$0xff]  }
  0xfd   : > { %1957 = vmatpush1.bf16.msra.mxu0 %v2949_v29  ;;  %v3039_v29 = vld [vmem:[%s3792_s3 + $0x6c] ss:$16 sps:$4 sm:$0xff]  }
  0xfe   : > { %1998 = vmatpush1.bf16.msra.mxu1 %v2952_v30  ;;  %1958 = vmatprep.subr.bf16.mxu0 %v2957_v31  ;;  %v3042_v30 = vld [vmem:[%s3792_s3 + $0x26c] ss:$16 sps:$4 sm:$0xff]   ;;  %v3037_v31 = vld [vmem:[%s3792_s3 + $0x68] ss:$16 sps:$4 sm:$0xff]  }
  0xff   : > { %1999 = vmatprep.subr.bf16.mxu1 %v2960_v32  ;;  %v3040_v32 = vld [vmem:[%s3792_s3 + $0x268] ss:$16 sps:$4 sm:$0xff]  }
 0x101   : > { %1959 = vmatpush1.bf16.msra.mxu0 %v2955_v35  ;;  %v3051_v35 = vld [vmem:[%s3792_s3 + $0xac] ss:$16 sps:$4 sm:$0xff]  }
 0x102   : > { %2000 = vmatpush1.bf16.msra.mxu1 %v2958_v36  ;;  %1960 = vmatprep.subr.bf16.mxu0 %v2963_v39  ;;  %v3054_v36 = vld [vmem:[%s3792_s3 + $0x2ac] ss:$16 sps:$4 sm:$0xff]   ;;  %v3049_v39 = vld [vmem:[%s3792_s3 + $0xa8] ss:$16 sps:$4 sm:$0xff]  }
 0x103   : > { %2001 = vmatprep.subr.bf16.mxu1 %v2966_v40  ;;  %v3052_v40 = vld [vmem:[%s3792_s3 + $0x2a8] ss:$16 sps:$4 sm:$0xff]  }
 0x105   : > { %1961 = vmatpush1.bf16.msra.mxu0 %v2961_v41  ;;  %v3057_v41 = vld [vmem:[%s3792_s3 + $0xcc] ss:$16 sps:$4 sm:$0xff]  }
 0x106   : > { %2002 = vmatpush1.bf16.msra.mxu1 %v2964_v42  ;;  %1962 = vmatprep.subr.bf16.mxu0 %v2969_v43  ;;  %v3060_v42 = vld [vmem:[%s3792_s3 + $0x2cc] ss:$16 sps:$4 sm:$0xff]   ;;  %v3055_v43 = vld [vmem:[%s3792_s3 + $0xc8] ss:$16 sps:$4 sm:$0xff]  }
 0x107   : > { %2003 = vmatprep.subr.bf16.mxu1 %v2972_v44  ;;  %v3058_v44 = vld [vmem:[%s3792_s3 + $0x2c8] ss:$16 sps:$4 sm:$0xff]  }
 0x109   : > { %1963 = vmatpush1.bf16.msra.mxu0 %v2967_v45  ;;  %v3063_v45 = vld [vmem:[%s3792_s3 + $0xec] ss:$16 sps:$4 sm:$0xff]  }
 0x10a   : > { %2004 = vmatpush1.bf16.msra.mxu1 %v2970_v46  ;;  %1964 = vmatprep.subr.bf16.mxu0 %v2975_v47  ;;  %v3066_v46 = vld [vmem:[%s3792_s3 + $0x2ec] ss:$16 sps:$4 sm:$0xff]   ;;  %v3061_v47 = vld [vmem:[%s3792_s3 + $0xe8] ss:$16 sps:$4 sm:$0xff]  }
 0x10b   : > { %2005 = vmatprep.subr.bf16.mxu1 %v2978_v49  ;;  %v3064_v49 = vld [vmem:[%s3792_s3 + $0x2e8] ss:$16 sps:$4 sm:$0xff]  }
 0x10d   : > { %1965 = vmatpush1.bf16.msra.mxu0 %v2973_v50  ;;  %v3069_v50 = vld [vmem:[%s3792_s3 + $0x10c] ss:$16 sps:$4 sm:$0xff]  }
 0x10e   : > { %2006 = vmatpush1.bf16.msra.mxu1 %v2976_v51  ;;  %1966 = vmatprep.subr.bf16.mxu0 %v2981_v53  ;;  %v3072_v51 = vld [vmem:[%s3792_s3 + $0x30c] ss:$16 sps:$4 sm:$0xff]   ;;  %v3067_v53 = vld [vmem:[%s3792_s3 + $0x108] ss:$16 sps:$4 sm:$0xff]  }
 0x10f   : > { %2007 = vmatprep.subr.bf16.mxu1 %v2984_v54  ;;  %v3070_v54 = vld [vmem:[%s3792_s3 + $0x308] ss:$16 sps:$4 sm:$0xff]  }
 0x111   : > { %1967 = vmatpush1.bf16.msra.mxu0 %v2979_v55  ;;  %v3075_v55 = vld [vmem:[%s3792_s3 + $0x12c] ss:$16 sps:$4 sm:$0xff]  }
 0x112   : > { %2008 = vmatpush1.bf16.msra.mxu1 %v2982_v56  ;;  %1968 = vmatprep.subr.bf16.mxu0 %v2987_v57  ;;  %v3078_v56 = vld [vmem:[%s3792_s3 + $0x32c] ss:$16 sps:$4 sm:$0xff]   ;;  %v3073_v57 = vld [vmem:[%s3792_s3 + $0x128] ss:$16 sps:$4 sm:$0xff]  }
 0x113   : > { %2009 = vmatprep.subr.bf16.mxu1 %v2990_v58  ;;  %v3076_v58 = vld [vmem:[%s3792_s3 + $0x328] ss:$16 sps:$4 sm:$0xff]  }
 0x115   : > { %1969 = vmatpush1.bf16.msra.mxu0 %v2985_v59  ;;  %v3081_v59 = vld [vmem:[%s3792_s3 + $0x14c] ss:$16 sps:$4 sm:$0xff]  }
 0x116   : > { %2010 = vmatpush1.bf16.msra.mxu1 %v2988_v60  ;;  %1970 = vmatprep.subr.bf16.mxu0 %v2993_v61  ;;  %v3084_v60 = vld [vmem:[%s3792_s3 + $0x34c] ss:$16 sps:$4 sm:$0xff]   ;;  %v3079_v61 = vld [vmem:[%s3792_s3 + $0x148] ss:$16 sps:$4 sm:$0xff]  }
 0x117   : > { %2011 = vmatprep.subr.bf16.mxu1 %v2996_v62  ;;  %v3082_v62 = vld [vmem:[%s3792_s3 + $0x348] ss:$16 sps:$4 sm:$0xff]  }
 0x119   : > { %1971 = vmatpush1.bf16.msra.mxu0 %v2991_v63  ;;  %v3087_v63 = vld [vmem:[%s3792_s3 + $0x16c] ss:$16 sps:$4 sm:$0xff]  }
 0x11a   : > { %2012 = vmatpush1.bf16.msra.mxu1 %v2994_v0  ;;  %1972 = vmatprep.subr.bf16.mxu0 %v2999_v1  ;;  %v3090_v0 = vld [vmem:[%s3792_s3 + $0x36c] ss:$16 sps:$4 sm:$0xff]   ;;  %v3085_v1 = vld [vmem:[%s3792_s3 + $0x168] ss:$16 sps:$4 sm:$0xff]  }
 0x11b   : > { %2013 = vmatprep.subr.bf16.mxu1 %v3002_v2  ;;  %v3088_v2 = vld [vmem:[%s3792_s3 + $0x368] ss:$16 sps:$4 sm:$0xff]  }
 0x11d   : > { %1973 = vmatpush1.bf16.msra.mxu0 %v2997_v3  ;;  %v3093_v3 = vld [vmem:[%s3792_s3 + $0x18c] ss:$16 sps:$4 sm:$0xff]  }
 0x11e   : > { %2014 = vmatpush1.bf16.msra.mxu1 %v3000_v4  ;;  %1974 = vmatprep.subr.bf16.mxu0 %v3005_v5  ;;  %v3096_v4 = vld [vmem:[%s3792_s3 + $0x38c] ss:$16 sps:$4 sm:$0xff]   ;;  %v3091_v5 = vld [vmem:[%s3792_s3 + $0x188] ss:$16 sps:$4 sm:$0xff]  }
 0x11f   : > { %2015 = vmatprep.subr.bf16.mxu1 %v3008_v6  ;;  %v3094_v6 = vld [vmem:[%s3792_s3 + $0x388] ss:$16 sps:$4 sm:$0xff]  }
 0x121   : > { %1975 = vmatpush1.bf16.msra.mxu0 %v3003_v9  ;;  %v3099_v9 = vld [vmem:[%s3792_s3 + $0x1ac] ss:$16 sps:$4 sm:$0xff]  }
 0x122   : > { %2016 = vmatpush1.bf16.msra.mxu1 %v3006_v10  ;;  %1976 = vmatprep.subr.bf16.mxu0 %v3011_v11  ;;  %v3102_v10 = vld [vmem:[%s3792_s3 + $0x3ac] ss:$16 sps:$4 sm:$0xff]   ;;  %v3097_v11 = vld [vmem:[%s3792_s3 + $0x1a8] ss:$16 sps:$4 sm:$0xff]  }
 0x123   : > { %2017 = vmatprep.subr.bf16.mxu1 %v3014_v12  ;;  %v3100_v12 = vld [vmem:[%s3792_s3 + $0x3a8] ss:$16 sps:$4 sm:$0xff]  }
 0x125   : > { %1977 = vmatpush1.bf16.msra.mxu0 %v3009_v13  ;;  %v3105_v13 = vld [vmem:[%s3792_s3 + $0x1cc] ss:$16 sps:$4 sm:$0xff]  }
 0x126   : > { %2018 = vmatpush1.bf16.msra.mxu1 %v3012_v14  ;;  %2028 = vmatprep.subr.bf16.mxu0 %v3021_v15  ;;  %v3108_v14 = vld [vmem:[%s3792_s3 + $0x3cc] ss:$16 sps:$4 sm:$0xff]   ;;  %v3103_v15 = vld [vmem:[%s3792_s3 + $0x1c8] ss:$16 sps:$4 sm:$0xff]  }
 0x127   : > { %2069 = vmatprep.subr.bf16.mxu1 %v3024_v16  ;;  %v3106_v16 = vld [vmem:[%s3792_s3 + $0x3c8] ss:$16 sps:$4 sm:$0xff]  }
 0x128   : > { %1979 = vmatmul.mubr.bf16.vlgmr.msra.gmra.mrb[4].mxu0 %v3978_v17 }
 0x129   : > { %2020 = vmatmul.mubr.bf16.vlgmr.msra.gmra.mrb[4].mxu1 %v3982_v18  ;;  %2029 = vmatpush1.bf16.msra.mxu0 %v3019_v19  ;;  %v3111_v19 = vld [vmem:[%s3792_s3 + $0x1ec] ss:$16 sps:$4 sm:$0xff]  }
 0x12a   : > { %2070 = vmatpush1.bf16.msra.mxu1 %v3022_v20  ;;  %2030 = vmatprep.subr.bf16.mxu0 %v3027_v21  ;;  %v3114_v20 = vld [vmem:[%s3792_s3 + $0x3ec] ss:$16 sps:$4 sm:$0xff]   ;;  %v3109_v21 = vld [vmem:[%s3792_s3 + $0x1e8] ss:$16 sps:$4 sm:$0xff]  }
 0x12b   : > { %2071 = vmatprep.subr.bf16.mxu1 %v3030_v22  ;;  %2060 = vmatprep.mubr.bf16.mxu0 %v3863_v48  ;;  %v3045_v48 = vld [vmem:[%s3792_s3 + $0x8c] ss:$16 sps:$4 sm:$0xff]   ;;  %v3112_v22 = vld [vmem:[%s3792_s3 + $0x3e8] ss:$16 sps:$4 sm:$0xff]  }
 0x12c   : > { %2101 = vmatprep.mubr.bf16.mxu1 %v3868_v52  ;;  %v3048_v52 = vld [vmem:[%s3792_s3 + $0x28c] ss:$16 sps:$4 sm:$0xff]  }
 0x12d   : > { %2031 = vmatpush1.bf16.msra.mxu0 %v3025_v23  ;;  %v3117_v23 = vld [vmem:[%s3792_s3 + $0x40c] ss:$16 sps:$4 sm:$0xff]  }
 0x12e   : > { %2072 = vmatpush1.bf16.msra.mxu1 %v3028_v24  ;;  %2032 = vmatprep.subr.bf16.mxu0 %v3033_v25  ;;  %v3120_v24 = vld [vmem:[%s3792_s3 + $0x60c] ss:$16 sps:$4 sm:$0xff]   ;;  %v3115_v25 = vld [vmem:[%s3792_s3 + $0x408] ss:$16 sps:$4 sm:$0xff]  }
 0x12f   : > { %2073 = vmatprep.subr.bf16.mxu1 %v3036_v26  ;;  %v3118_v26 = vld [vmem:[%s3792_s3 + $0x608] ss:$16 sps:$4 sm:$0xff]  }
 0x131   : > { %2033 = vmatpush1.bf16.msra.mxu0 %v3031_v27  ;;  %v3123_v27 = vld [vmem:[%s3792_s3 + $0x42c] ss:$16 sps:$4 sm:$0xff]  }
 0x132   : > { %2074 = vmatpush1.bf16.msra.mxu1 %v3034_v28  ;;  %2034 = vmatprep.subr.bf16.mxu0 %v3039_v29  ;;  %v3126_v28 = vld [vmem:[%s3792_s3 + $0x62c] ss:$16 sps:$4 sm:$0xff]   ;;  %v3121_v29 = vld [vmem:[%s3792_s3 + $0x428] ss:$16 sps:$4 sm:$0xff]  }
 0x133   : > { %2075 = vmatprep.subr.bf16.mxu1 %v3042_v30  ;;  %v3124_v30 = vld [vmem:[%s3792_s3 + $0x628] ss:$16 sps:$4 sm:$0xff]  }
 0x135   : > { %2035 = vmatpush1.bf16.msra.mxu0 %v3037_v31  ;;  %v3129_v31 = vld [vmem:[%s3792_s3 + $0x44c] ss:$16 sps:$4 sm:$0xff]  }
 0x136   : > { %2076 = vmatpush1.bf16.msra.mxu1 %v3040_v32  ;;  %2036 = vmatprep.subr.bf16.mxu0 %v3045_v48  ;;  %v3132_v32 = vld [vmem:[%s3792_s3 + $0x64c] ss:$16 sps:$4 sm:$0xff]  }
 0x137   : > { %2077 = vmatprep.subr.bf16.mxu1 %v3048_v52  ;;  %v3135_v48 = vld [vmem:[%s3792_s3 + $0x46c] ss:$16 sps:$4 sm:$0xff]  }
 0x138   : > { %v3138_v52 = vld [vmem:[%s3792_s3 + $0x66c] ss:$16 sps:$4 sm:$0xff]  }
 0x139   : > { %2037 = vmatpush1.bf16.msra.mxu0 %v3043_v33  ;;  %v3133_v33 = vld [vmem:[%s3792_s3 + $0x468] ss:$16 sps:$4 sm:$0xff]  }
 0x13a   : > { %2078 = vmatpush1.bf16.msra.mxu1 %v3046_v34  ;;  %2038 = vmatprep.subr.bf16.mxu0 %v3051_v35  ;;  %v3144_v34 = vld [vmem:[%s3792_s3 + $0x68c] ss:$16 sps:$4 sm:$0xff]   ;;  %v3139_v35 = vld [vmem:[%s3792_s3 + $0x488] ss:$16 sps:$4 sm:$0xff]  }
 0x13b   : > { %2079 = vmatprep.subr.bf16.mxu1 %v3054_v36  ;;  %v3142_v36 = vld [vmem:[%s3792_s3 + $0x688] ss:$16 sps:$4 sm:$0xff]  }
 0x13d   : > { %2039 = vmatpush1.bf16.msra.mxu0 %v3049_v39  ;;  %v3147_v39 = vld [vmem:[%s3792_s3 + $0x4ac] ss:$16 sps:$4 sm:$0xff]  }
 0x13e   : > { %2080 = vmatpush1.bf16.msra.mxu1 %v3052_v40  ;;  %2040 = vmatprep.subr.bf16.mxu0 %v3057_v41  ;;  %v3150_v40 = vld [vmem:[%s3792_s3 + $0x6ac] ss:$16 sps:$4 sm:$0xff]   ;;  %v3145_v41 = vld [vmem:[%s3792_s3 + $0x4a8] ss:$16 sps:$4 sm:$0xff]  }
 0x13f   : > { %2081 = vmatprep.subr.bf16.mxu1 %v3060_v42  ;;  %v3148_v42 = vld [vmem:[%s3792_s3 + $0x6a8] ss:$16 sps:$4 sm:$0xff]  }
 0x141   : > { %2041 = vmatpush1.bf16.msra.mxu0 %v3055_v43  ;;  %v3153_v43 = vld [vmem:[%s3792_s3 + $0x4cc] ss:$16 sps:$4 sm:$0xff]  }
 0x142   : > { %2082 = vmatpush1.bf16.msra.mxu1 %v3058_v44  ;;  %2042 = vmatprep.subr.bf16.mxu0 %v3063_v45  ;;  %v3156_v44 = vld [vmem:[%s3792_s3 + $0x6cc] ss:$16 sps:$4 sm:$0xff]   ;;  %v3151_v45 = vld [vmem:[%s3792_s3 + $0x4c8] ss:$16 sps:$4 sm:$0xff]  }
 0x143   : > { %2083 = vmatprep.subr.bf16.mxu1 %v3066_v46  ;;  %v3154_v46 = vld [vmem:[%s3792_s3 + $0x6c8] ss:$16 sps:$4 sm:$0xff]  }
 0x145   : > { %2043 = vmatpush1.bf16.msra.mxu0 %v3061_v47  ;;  %v3159_v47 = vld [vmem:[%s3792_s3 + $0x4ec] ss:$16 sps:$4 sm:$0xff]  }
 0x146   : > { %2084 = vmatpush1.bf16.msra.mxu1 %v3064_v49  ;;  %2044 = vmatprep.subr.bf16.mxu0 %v3069_v50  ;;  %v3162_v49 = vld [vmem:[%s3792_s3 + $0x6ec] ss:$16 sps:$4 sm:$0xff]   ;;  %v3157_v50 = vld [vmem:[%s3792_s3 + $0x4e8] ss:$16 sps:$4 sm:$0xff]  }
 0x147   : > { %2085 = vmatprep.subr.bf16.mxu1 %v3072_v51  ;;  %v3160_v51 = vld [vmem:[%s3792_s3 + $0x6e8] ss:$16 sps:$4 sm:$0xff]  }
 0x149   : > { %2045 = vmatpush1.bf16.msra.mxu0 %v3067_v53  ;;  %v3165_v53 = vld [vmem:[%s3792_s3 + $0x50c] ss:$16 sps:$4 sm:$0xff]  }
 0x14a   : > { %2086 = vmatpush1.bf16.msra.mxu1 %v3070_v54  ;;  %2046 = vmatprep.subr.bf16.mxu0 %v3075_v55  ;;  %v3168_v54 = vld [vmem:[%s3792_s3 + $0x70c] ss:$16 sps:$4 sm:$0xff]   ;;  %v3163_v55 = vld [vmem:[%s3792_s3 + $0x508] ss:$16 sps:$4 sm:$0xff]  }
 0x14b   : > { %2087 = vmatprep.subr.bf16.mxu1 %v3078_v56  ;;  %v3166_v56 = vld [vmem:[%s3792_s3 + $0x708] ss:$16 sps:$4 sm:$0xff]  }
 0x14d   : > { %2047 = vmatpush1.bf16.msra.mxu0 %v3073_v57  ;;  %v3171_v57 = vld [vmem:[%s3792_s3 + $0x52c] ss:$16 sps:$4 sm:$0xff]  }
 0x14e   : > { %2088 = vmatpush1.bf16.msra.mxu1 %v3076_v58  ;;  %2048 = vmatprep.subr.bf16.mxu0 %v3081_v59  ;;  %v3174_v58 = vld [vmem:[%s3792_s3 + $0x72c] ss:$16 sps:$4 sm:$0xff]   ;;  %v3169_v59 = vld [vmem:[%s3792_s3 + $0x528] ss:$16 sps:$4 sm:$0xff]  }
 0x14f   : > { %2089 = vmatprep.subr.bf16.mxu1 %v3084_v60  ;;  %v3172_v60 = vld [vmem:[%s3792_s3 + $0x728] ss:$16 sps:$4 sm:$0xff]  }
 0x151   : > { %2049 = vmatpush1.bf16.msra.mxu0 %v3079_v61  ;;  %v3177_v61 = vld [vmem:[%s3792_s3 + $0x54c] ss:$16 sps:$4 sm:$0xff]  }
 0x152   : > { %2090 = vmatpush1.bf16.msra.mxu1 %v3082_v62  ;;  %2050 = vmatprep.subr.bf16.mxu0 %v3087_v63  ;;  %v3180_v62 = vld [vmem:[%s3792_s3 + $0x74c] ss:$16 sps:$4 sm:$0xff]   ;;  %v3175_v63 = vld [vmem:[%s3792_s3 + $0x548] ss:$16 sps:$4 sm:$0xff]  }
 0x153   : > { %2091 = vmatprep.subr.bf16.mxu1 %v3090_v0  ;;  %v3178_v0 = vld [vmem:[%s3792_s3 + $0x748] ss:$16 sps:$4 sm:$0xff]  }
 0x155   : > { %2051 = vmatpush1.bf16.msra.mxu0 %v3085_v1  ;;  %v3183_v1 = vld [vmem:[%s3792_s3 + $0x56c] ss:$16 sps:$4 sm:$0xff]  }
 0x156   : > { %2092 = vmatpush1.bf16.msra.mxu1 %v3088_v2  ;;  %2052 = vmatprep.subr.bf16.mxu0 %v3093_v3  ;;  %v3186_v2 = vld [vmem:[%s3792_s3 + $0x76c] ss:$16 sps:$4 sm:$0xff]   ;;  %v3181_v3 = vld [vmem:[%s3792_s3 + $0x568] ss:$16 sps:$4 sm:$0xff]  }
 0x157   : > { %2093 = vmatprep.subr.bf16.mxu1 %v3096_v4  ;;  %v3184_v4 = vld [vmem:[%s3792_s3 + $0x768] ss:$16 sps:$4 sm:$0xff]  }
 0x159   : > { %2053 = vmatpush1.bf16.msra.mxu0 %v3091_v5  ;;  %v3189_v5 = vld [vmem:[%s3792_s3 + $0x58c] ss:$16 sps:$4 sm:$0xff]  }
 0x15a   : > { %2094 = vmatpush1.bf16.msra.mxu1 %v3094_v6  ;;  %2054 = vmatprep.subr.bf16.mxu0 %v3099_v9  ;;  %v3192_v6 = vld [vmem:[%s3792_s3 + $0x78c] ss:$16 sps:$4 sm:$0xff]   ;;  %v3187_v9 = vld [vmem:[%s3792_s3 + $0x588] ss:$16 sps:$4 sm:$0xff]  }
 0x15b   : > { %2095 = vmatprep.subr.bf16.mxu1 %v3102_v10  ;;  %v3190_v10 = vld [vmem:[%s3792_s3 + $0x788] ss:$16 sps:$4 sm:$0xff]  }
 0x15d   : > { %2055 = vmatpush1.bf16.msra.mxu0 %v3097_v11  ;;  %v3195_v11 = vld [vmem:[%s3792_s3 + $0x5ac] ss:$16 sps:$4 sm:$0xff]  }
 0x15e   : > { %2096 = vmatpush1.bf16.msra.mxu1 %v3100_v12  ;;  %2056 = vmatprep.subr.bf16.mxu0 %v3105_v13  ;;  %v3198_v12 = vld [vmem:[%s3792_s3 + $0x7ac] ss:$16 sps:$4 sm:$0xff]   ;;  %v3193_v13 = vld [vmem:[%s3792_s3 + $0x5a8] ss:$16 sps:$4 sm:$0xff]  }
 0x15f   : > { %2097 = vmatprep.subr.bf16.mxu1 %v3108_v14  ;;  %v3196_v14 = vld [vmem:[%s3792_s3 + $0x7a8] ss:$16 sps:$4 sm:$0xff]  }
 0x161   : > { %2057 = vmatpush1.bf16.msra.mxu0 %v3103_v15  ;;  %v3201_v15 = vld [vmem:[%s3792_s3 + $0x5cc] ss:$16 sps:$4 sm:$0xff]  }
 0x162   : > { %2098 = vmatpush1.bf16.msra.mxu1 %v3106_v16  ;;  %2058 = vmatprep.subr.bf16.mxu0 %v3111_v19  ;;  %v3204_v16 = vld [vmem:[%s3792_s3 + $0x7cc] ss:$16 sps:$4 sm:$0xff]   ;;  %v3199_v19 = vld [vmem:[%s3792_s3 + $0x5c8] ss:$16 sps:$4 sm:$0xff]  }
 0x163   : > { %2099 = vmatprep.subr.bf16.mxu1 %v3114_v20  ;;  %v3202_v20 = vld [vmem:[%s3792_s3 + $0x7c8] ss:$16 sps:$4 sm:$0xff]  }
 0x165   : > { %2059 = vmatpush1.bf16.msra.mxu0 %v3109_v21  ;;  %v3207_v21 = vld [vmem:[%s3792_s3 + $0x5ec] ss:$16 sps:$4 sm:$0xff]  }
 0x166   : > { %2100 = vmatpush1.bf16.msra.mxu1 %v3112_v22  ;;  %2110 = vmatprep.subr.bf16.mxu0 %v3117_v23  ;;  %v3210_v22 = vld [vmem:[%s3792_s3 + $0x7ec] ss:$16 sps:$4 sm:$0xff]   ;;  %v3205_v23 = vld [vmem:[%s3792_s3 + $0x5e8] ss:$16 sps:$4 sm:$0xff]  }
 0x167   : > { %2151 = vmatprep.subr.bf16.mxu1 %v3120_v24  ;;  %v3208_v24 = vld [vmem:[%s3792_s3 + $0x7e8] ss:$16 sps:$4 sm:$0xff]  }
 0x168   : > { %2061 = vmatmul.mubr.bf16.vlgmr.msra.gmra.mrb[8].mxu0 %v3890_v7  ;;  %v3127_v7 = vld [vmem:[%s3792_s3 + $0x448] ss:$16 sps:$4 sm:$0xff]  }
 0x169   : > { %2102 = vmatmul.mubr.bf16.vlgmr.msra.gmra.mrb[8].mxu1 %v3892_v8  ;;  %2111 = vmatpush1.bf16.msra.mxu0 %v3115_v25  ;;  %v3130_v8 = vld [vmem:[%s3792_s3 + $0x648] ss:$16 sps:$4 sm:$0xff]  }
 0x16a   : > { %2152 = vmatpush1.bf16.msra.mxu1 %v3118_v26  ;;  %2112 = vmatprep.subr.bf16.mxu0 %v3123_v27 }
 0x16b   : > { %2153 = vmatprep.subr.bf16.mxu1 %v3126_v28  ;;  %2142 = vmatprep.mubr.bf16.mxu0 %v3930_v37  ;;  %v3136_v37 = vld [vmem:[%s3792_s3 + $0x668] ss:$16 sps:$4 sm:$0xff]  }
 0x16c   : > { %2183 = vmatprep.mubr.bf16.mxu1 %v3934_v38  ;;  %v3141_v38 = vld [vmem:[%s3792_s3 + $0x48c] ss:$16 sps:$4 sm:$0xff]  }
 0x16d   : > { %2113 = vmatpush1.bf16.msra.mxu0 %v3121_v29 }
 0x16e   : > { %2154 = vmatpush1.bf16.msra.mxu1 %v3124_v30  ;;  %2114 = vmatprep.subr.bf16.mxu0 %v3129_v31 }
 0x16f   : > { %2155 = vmatprep.subr.bf16.mxu1 %v3132_v32 }
 0x171   : > { %2115 = vmatpush1.bf16.msra.mxu0 %v3127_v7 }
 0x172   : > { %2156 = vmatpush1.bf16.msra.mxu1 %v3130_v8  ;;  %2116 = vmatprep.subr.bf16.mxu0 %v3135_v48 }
 0x173   : > { %2157 = vmatprep.subr.bf16.mxu1 %v3138_v52 }
 0x175   : > { %2117 = vmatpush1.bf16.msra.mxu0 %v3133_v33 }
 0x176   : > { %2158 = vmatpush1.bf16.msra.mxu1 %v3136_v37  ;;  %2118 = vmatprep.subr.bf16.mxu0 %v3141_v38 }
 0x177   : > { %2159 = vmatprep.subr.bf16.mxu1 %v3144_v34 }
 0x179   : > { %2119 = vmatpush1.bf16.msra.mxu0 %v3139_v35 }
 0x17a   : > { %2160 = vmatpush1.bf16.msra.mxu1 %v3142_v36  ;;  %2120 = vmatprep.subr.bf16.mxu0 %v3147_v39  ;;  %v293_v39 = vld [vmem:[%s3809_s1 + $0x8] sm:$0xff] }
 0x17b   : > { %2161 = vmatprep.subr.bf16.mxu1 %v3150_v40 }
 0x17d   : > { %2121 = vmatpush1.bf16.msra.mxu0 %v3145_v41 }
 0x17e   : > { %2162 = vmatpush1.bf16.msra.mxu1 %v3148_v42  ;;  %2122 = vmatprep.subr.bf16.mxu0 %v3153_v43 }
 0x17f   : > { %2163 = vmatprep.subr.bf16.mxu1 %v3156_v44 }
 0x181   : > { %2123 = vmatpush1.bf16.msra.mxu0 %v3151_v45 }
 0x182   : > { %2164 = vmatpush1.bf16.msra.mxu1 %v3154_v46  ;;  %2124 = vmatprep.subr.bf16.mxu0 %v3159_v47 }
 0x183   : > { %2165 = vmatprep.subr.bf16.mxu1 %v3162_v49 }
 0x185   : > { %2125 = vmatpush1.bf16.msra.mxu0 %v3157_v50 }
 0x186   : > { %2166 = vmatpush1.bf16.msra.mxu1 %v3160_v51  ;;  %2126 = vmatprep.subr.bf16.mxu0 %v3165_v53 }
 0x187   : > { %2167 = vmatprep.subr.bf16.mxu1 %v3168_v54 }
 0x189   : > { %2127 = vmatpush1.bf16.msra.mxu0 %v3163_v55 }
 0x18a   : > { %2168 = vmatpush1.bf16.msra.mxu1 %v3166_v56  ;;  %2128 = vmatprep.subr.bf16.mxu0 %v3171_v57 }
 0x18b   : > { %2169 = vmatprep.subr.bf16.mxu1 %v3174_v58 }
 0x18d   : > { %2129 = vmatpush1.bf16.msra.mxu0 %v3169_v59 }
 0x18e   : > { %2170 = vmatpush1.bf16.msra.mxu1 %v3172_v60  ;;  %2130 = vmatprep.subr.bf16.mxu0 %v3177_v61 }
 0x18f   : > { %2171 = vmatprep.subr.bf16.mxu1 %v3180_v62  ;;  %v294_v62 = vld [vmem:[%s3809_s1 + $0x10] sm:$0xff] }
 0x191   : > { %2131 = vmatpush1.bf16.msra.mxu0 %v3175_v63 }
 0x192   : > { %2172 = vmatpush1.bf16.msra.mxu1 %v3178_v0  ;;  %2132 = vmatprep.subr.bf16.mxu0 %v3183_v1 }
 0x193   : > { %2173 = vmatprep.subr.bf16.mxu1 %v3186_v2 }
 0x195   : > { %2133 = vmatpush1.bf16.msra.mxu0 %v3181_v3  ;;  %v295_v3 = vld [vmem:[%s3809_s1 + $0x18] sm:$0xff] }
 0x196   : > { %2174 = vmatpush1.bf16.msra.mxu1 %v3184_v4  ;;  %2134 = vmatprep.subr.bf16.mxu0 %v3189_v5 }
 0x197   : > { %2175 = vmatprep.subr.bf16.mxu1 %v3192_v6 }
 0x199   : > { %2135 = vmatpush1.bf16.msra.mxu0 %v3187_v9 }
 0x19a   : > { %2176 = vmatpush1.bf16.msra.mxu1 %v3190_v10  ;;  %2136 = vmatprep.subr.bf16.mxu0 %v3195_v11  ;;  %v2210_v11 = vlaneseq (!%p2669_p9) }
 0x19b   : > { %2177 = vmatprep.subr.bf16.mxu1 %v3198_v12 }
 0x19c   : > { %v2211_v12 = vshrl.u32 (!%p2669_p9), %v2210_v11, 7 }
 0x19d   : > { %2137 = vmatpush1.bf16.msra.mxu0 %v3193_v13  ;;  %v2208_v13 = vld [vmem:[%s3802_s28] sm:$0xf] (!%p2669_p9) }
 0x19e   : > { %2178 = vmatpush1.bf16.msra.mxu1 %v3196_v14  ;;  %2138 = vmatprep.subr.bf16.mxu0 %v3201_v15  ;;  %v2212_v15 = vsub.s32 (!%p2669_p9), 0, %v2211_v12 }
 0x19f   : > { %2179 = vmatprep.subr.bf16.mxu1 %v3204_v16  ;;  %v2216_v16 = vsub.s32 (!%p2669_p9), 1, %v2211_v12 }
 0x1a1   : > { %2139 = vmatpush1.bf16.msra.mxu0 %v3199_v19  ;;  %v2220_v19 = vsub.s32 (!%p2669_p9), 2, %v2211_v12 }
 0x1a2   : > { %2180 = vmatpush1.bf16.msra.mxu1 %v3202_v20  ;;  %2140 = vmatprep.subr.bf16.mxu0 %v3207_v21  ;;  %v2224_v20 = vsub.s32 (!%p2669_p9), 3, %v2211_v12 }
 0x1a3   : > { %2181 = vmatprep.subr.bf16.mxu1 %v3210_v22 }
 0x1a5   : > { %2141 = vmatpush1.bf16.msra.mxu0 %v3205_v23 }
 0x1a6   : > { %2182 = vmatpush1.bf16.msra.mxu1 %v3208_v24  ;;  %v2213_v24 = vrot.slane (!%p2669_p9), %v2208_v13, %v2212_v15 }
 0x1a8   : > { %2143 = vmatmul.mubr.bf16.vlgmr.msra.gmra.mrb[12].mxu0 %v3978_v17 }
 0x1a9   : > { %2184 = vmatmul.mubr.bf16.vlgmr.msra.gmra.mrb[12].mxu1 %v3982_v18  ;;  %v292_v18 = vld [vmem:[%s3809_s1] sm:$0xff] }
 0x1bb   : > { %v1898_v25 = vpop.f32.mrb[0].mxu0 }
 0x1bc   : > { %v1939_v26 = vpop.f32.mrb[0].mxu1  ;;  %v1900_v28 = vpop.f32.mrb[1].mxu0 }
 0x1bd   : > { %v1940_v27 = vadd.f32 %v1939_v26, %v1898_v25  ;;  %v1941_v29 = vpop.f32.mrb[1].mxu1  ;;  %v1902_v31 = vpop.f32.mrb[2].mxu0  ;;  %v2217_v25 = vrot.slane (!%p2669_p9), %v2208_v13, %v2216_v16  ;;  %v2221_v26 = vrot.slane (!%p2669_p9), %v2208_v13, %v2220_v19 }
 0x1be   : > { %v1942_v30 = vadd.f32 %v1941_v29, %v1900_v28  ;;  %v1943_v32 = vpop.f32.mrb[2].mxu1  ;;  %v1903_v7 = vpop.f32.mrb[3].mxu0 }
 0x1bf   : > { %v1944_v8 = vpop.f32.mrb[3].mxu1 }
 0x1fb   : > { %v1980_v48 = vpop.f32.mrb[4].mxu0 }
 0x1fc   : > { %v2021_v52 = vpop.f32.mrb[4].mxu1  ;;  %v1981_v33 = vadd.f32 %v1980_v48, %v1940_v27  ;;  %v1982_v17 = vpop.f32.mrb[5].mxu0  ;;  %v2225_v27 = vrot.slane (!%p2669_p9), %v2208_v13, %v2224_v20 }
 0x1fd   : > { %v2023_v37 = vpop.f32.mrb[5].mxu1  ;;  %v1983_v38 = vadd.f32 %v1982_v17, %v1942_v30  ;;  %v1984_v34 = vpop.f32.mrb[6].mxu0 }
 0x1fe   : > { %v2025_v35 = vpop.f32.mrb[6].mxu1  ;;  %v2022_v36 = vadd.f32 %v2021_v52, %v1981_v33  ;;  %v1985_v40 = vpop.f32.mrb[7].mxu0 }
 0x1ff   : > { %v2026_v41 = vpop.f32.mrb[7].mxu1  ;;  %v2024_v42 = vadd.f32 %v2023_v37, %v1983_v38 }
 0x200   : > { %v2192_v43 = vadd.f32 %v2022_v36, %v292_v18 }
 0x201   : > { %v2193_v44 = vadd.f32 %v2024_v42, %v293_v39 }
 0x202   : > { %2196 = vst [vmem:[%s3809_s1] sm:$0xff] %v2192_v43 }
 0x203   : > { %2197 = vst [vmem:[%s3809_s1 + $0x8] sm:$0xff] %v2193_v44 }
 0x209   : > { %v2204_v14 = vld [vmem:[%s3809_s1] sm:$0xff] (!%p2669_p9) }
 0x20a   : > { %v2205_v21 = vld [vmem:[%s3809_s1 + $0x8] sm:$0xff] (!%p2669_p9)  ;;  %v2230_v28 = vadd.f32 (!%p2669_p9), %v2213_v24, %v2204_v14 }
 0x20b   : > { %v2231_v29 = vadd.f32 (!%p2669_p9), %v2217_v25, %v2205_v21 }
 0x20c   : > { %v2234_v32 = vmax.f32 (!%p2669_p9), %v2230_v28, 0.0 }
 0x20d   : > { %v2235_v7 = vmax.f32 (!%p2669_p9), %v2231_v29, 0.0 }
 0x20e   : > { %2238 = vst [vmem:[%s3809_s1] sm:$0xff] (!%p2669_p9), %v2234_v32 }
 0x20f   : > { %2239 = vst [vmem:[%s3809_s1 + $0x8] sm:$0xff] (!%p2669_p9), %v2235_v7 }
 0x23b   : > { %v2062_v45 = vpop.f32.mrb[8].mxu0 }
 0x23c   : > { %v2103_v46 = vpop.f32.mrb[8].mxu1  ;;  %v2064_v49 = vpop.f32.mrb[9].mxu0 }
 0x23d   : > { %v2104_v47 = vadd.f32 %v2103_v46, %v2062_v45  ;;  %v2105_v50 = vpop.f32.mrb[9].mxu1  ;;  %v2066_v53 = vpop.f32.mrb[10].mxu0 }
 0x23e   : > { %v2106_v51 = vadd.f32 %v2105_v50, %v2064_v49  ;;  %v2107_v54 = vpop.f32.mrb[10].mxu1  ;;  %v2067_v55 = vpop.f32.mrb[11].mxu0 }
 0x23f   : > { %v2108_v56 = vpop.f32.mrb[11].mxu1 }
 0x27b   : > { %v2144_v57 = vpop.f32.mrb[12].mxu0 }
 0x27c   : > { %v2185_v58 = vpop.f32.mrb[12].mxu1  ;;  %v2145_v59 = vadd.f32 %v2144_v57, %v2104_v47  ;;  %v2146_v60 = vpop.f32.mrb[13].mxu0 }
 0x27d   : > { %v2187_v61 = vpop.f32.mrb[13].mxu1  ;;  %v2147_v63 = vadd.f32 %v2146_v60, %v2106_v51  ;;  %v2148_v0 = vpop.f32.mrb[14].mxu0  ;;  %2203 = sbr.rel (%p2669_p9) target bundleno = 656 (0x290), region = 52 }
 0x27e   : > { %v2189_v1 = vpop.f32.mrb[14].mxu1  ;;  %v2186_v2 = vadd.f32 %v2185_v58, %v2145_v59  ;;  %v2149_v4 = vpop.f32.mrb[15].mxu0 }
 0x27f   : > { %v2190_v5 = vpop.f32.mrb[15].mxu1  ;;  %v2188_v6 = vadd.f32 %v2187_v61, %v2147_v63 }
 0x280   : > { %v2194_v9 = vadd.f32 %v2186_v2, %v294_v62 }
 0x281   : > { %v2195_v10 = vadd.f32 %v2188_v6, %v295_v3 }
 0x282   : > { %2198 = vst [vmem:[%s3809_s1 + $0x10] sm:$0xff] %v2194_v9 }
 0x283   : > { %2199 = vst [vmem:[%s3809_s1 + $0x18] sm:$0xff] %v2195_v10 }
 0x289   : > { %v2206_v22 = vld [vmem:[%s3809_s1 + $0x10] sm:$0xff] }
 0x28a   : > { %v2207_v23 = vld [vmem:[%s3809_s1 + $0x18] sm:$0xff]  ;;  %v2232_v30 = vadd.f32 %v2221_v26, %v2206_v22 }
 0x28b   : > { %v2233_v31 = vadd.f32 %v2225_v27, %v2207_v23 }
 0x28c   : > { %v2236_v8 = vmax.f32 %v2232_v30, 0.0 }
 0x28d   : > { %v2237_v48 = vmax.f32 %v2233_v31, 0.0 }
 0x28e   : > { %2240 = vst [vmem:[%s3809_s1 + $0x10] sm:$0xff] %v2236_v8 }
 0x28f   : > { %2241 = vst [vmem:[%s3809_s1 + $0x18] sm:$0xff] %v2237_v48 }
 0x290 PF: > { %s4265_s21 = sld [smem:[#allocation14_spill]]  ;;  %s4266_s22 = sld [smem:[#allocation21_spill]] }
 0x291   : > { %s2257_s24 = sshll.u32 %s3809_s1, 4  ;;  %s2243_s20 = scalar_lea.sflag [#allocation4], %s3799_s10  ;;  %s2258_s24 = int_to_ptr.vmem [resolvable:$true] %s2257_s24 }
 0x292   : > { %s3301_s0 = scalar_lea.vmem %s2258_s24, 512  ;;  %p4268_p0 = scmp.ne.s32.totalorder %s4257_s30, 0 }
 0x293   : > { %p3302_p1 = scmp.ne.s32.totalorder %s2258_s24, %s3301_s0  ;;  %s3464_s29 = smov [#allocation8]  }
 0x294   : > { %s3305_s6 = sshll.u32 %s3464_s29, 4  ;;  %s3306_s6 = int_to_ptr.vmem [resolvable:$false] %s3305_s6 }
 0x295   : > { %p3303_p5 = pnand %p3302_p1, %p4268_p0  ;;  %s3307_s3 = scalar_lea.vmem %s3306_s6, 1024 }
 0x296   : > { %s2678_s5 = sshll.u32 %s4265_s21, 9  ;;  %s4267_s26 = smov %s4266_s22 }
 0x297   : > { %s4142_s15 = scalar_lea.hbm %s4266_s22, %s2678_s5  ;;  %p3304_p3 = pneg %p3303_p5 }
 0x298   : > { %p3308_p7 = scmp.lt.s32.totalorder %s2258_s24, %s3306_s6  ;;  %p3309_p12 = scmp.lt.s32.totalorder %s3307_s3, %s3301_s0 }
 0x29a   : > { %p3310_p8 = por %p3309_p12, %p3308_p7 }
 0x29c   : > { %p3311_p13 = pnand %p3310_p8, %p3304_p3 }
 0x29e   : > { %3314 = shalt.err (!%p3311_p13)
}
 0x29f   : > { %s3315_s10 = scalar_lea.hbm %s4142_s15, 512  ;;  %s3319_s8 = scalar_lea.hbm %s4267_s26, 1024 }
 0x2a0   : > { %p3316_p10 = scmp.ne.s32.totalorder %s4142_s15, %s3315_s10  ;;  %p3320_p6 = scmp.lt.u32.totalorder %s4142_s15, %s4267_s26 }
 0x2a1   : > { %p3321_p11 = scmp.lt.u32.totalorder %s3319_s8, %s3315_s10  ;;  %p3323_p1 = scmp.lt.u32.totalorder %s3315_s10, %s4142_s15 }
 0x2a2   : > { %p3317_p4 = pnand %p3316_p10, %p4268_p0 }
 0x2a3   : > { %p3322_p9 = por %p3321_p11, %p3320_p6 }
 0x2a4   : > { %p3318_p2 = pneg %p3317_p4 }
 0x2a5   : > { %p3324_p5 = por %p3323_p1, %p3322_p9 }
 0x2a7   : > { %p3325_p3 = pnand %p3324_p5, %p3318_p2 }
 0x2a9   : > { %3328 = shalt.err (!%p3325_p3)
}
 0x2aa   : > { %2685 = dma.vmem_to_hbm [thread:$0]  (%p4268_p0), %s2258_s24, 512, %s4142_s15, %s2243_s20  }
 0x2ab PF: > { %p2702_p7 = scmp.ge.s32.totalorder %s3455_s25, 2  ;;  %s2269_s5 = sand.u32 1, %s3403_s12  }
 0x2ac   : > { %p4269_p12 = scmp.ne.s32.totalorder %s4258_s7, 0  ;;  %s2270_s18 = scalar_lea.sflag [#allocation4], %s2269_s5 }
 0x2ae   : > { %p2698_p8 = pnand %p2702_p7, %p4269_p12 }
 0x2b0   : > { %3398 = dma.done.wait (!%p2698_p8), %s2270_s18, 512  }
 0x2b1   : > { %3400 = vsyncadd (!%p2698_p8), %s2270_s18, 4294966784  ;;  %s22_s25 = sadd.s32 1, %s3455_s25   ;;  %s4271_s30 = sld [smem:[#allocation13_spill]] }
 0x2b2   : > { %p4168_p13 = scmp.ge.s32.totalorder %s22_s25, 6   ;;  %s4272_s20 = sld [smem:[#allocation18_spill]] }
 0x2b3   : > { %s4273_s22 = sld [smem:[#allocation15_spill]]  ;;  %s4274_s7 = sld [smem:[#allocation16_spill]] }
 0x2b4   : > { %s4275_s24 = sld [smem:[#allocation17_spill]]  ;;  %s4276_s12 = smov %s3407_s13 }
 0x2b5   : > { %s4277_s13 = smov %s3411_s14  ;;  %s4278_s14 = smov %s3719_s4 }
 0x2b6   : > { %s4279_s15 = smov %s3419_s16  ;;  %s4280_s16 = smov %s3423_s17 }
 0x2b7   : > { %s4281_s17 = smov %s3671_s11  ;;  %s4282_s18 = smov %s3431_s19 }
 0x2b8   : > { %s4283_s19 = smov %s4271_s30  ;;  %s4284_s21 = smov %s3447_s23 }
 0x2b9   : > { %s4285_s23 = smov %s4274_s7  ;;  %21 = sbr.rel (!%p4168_p13) target bundleno = 16 (0x10), region = 109 }
 0x2c0   :  { %2275 = vsyncpa [#allocation3], 1 }
 0x2c1   :  { %2277 = vsyncpa [#allocation3 + $0x1], 1 }
 0x2c2   :  { %2278 = vsyncpa [#allocation6], 1 }
 0x2c3   :  { %2280 = vsyncpa [#allocation6 + $0x1], 1 }
 0x2c4   :  { %2281 = vsyncpa [#allocation4], 1 }
 0x2c5   :  { %2283 = vsyncpa [#allocation4 + $0x1], 1 }

</bundles_post_ra>
